<compile_context>
chip_gen: v7x
topology: tpu7x:2x2x1
jax: 0.10.0
libtpu: 0.0.40
codegen_flags: <defaults>
</compile_context>

<pallas_src>
import functools

import jax
import jax.numpy as jnp
import numpy as np
from jax.experimental import pallas as pl
from jax.experimental.pallas import tpu as pltpu


# ----------------------------- fused Pallas kernel ---------------------------

def fused_lstm_fc_kernel(*refs, num_layers):
    """Entire forward pass in a single kernel invocation.

    refs[0]                      : (B, T, D)      input sequence (batch-first), f32
    refs[1]                      : (D, 4H)        layer-0 W_ih^T, bf16
    refs[2]                      : (H, 4H)        layer-0 W_hh^T, bf16
    refs[3]                      : (1, 4H)        layer-0 bias (b_ih + b_hh), f32
    per layer l in 1..L-1:
      refs[4 + 2(l-1)]           : (2H, 4H)       stacked [W_ih^T; W_hh^T], bf16
      refs[5 + 2(l-1)]           : (1, 4H)        bias (b_ih + b_hh), f32
    refs[-3]                     : (H, O*F)       fc weight^T, bf16
    refs[-2]                     : (1, O*F)       fc bias, f32
    refs[-1]                     : (B, O*F)       output ref (only HBM write)
    """
    x_ref = refs[0]
    w_ih0 = refs[1][...]
    w_hh0 = refs[2][...]
    b0 = refs[3][...]
    fc_w = refs[-3][...]
    fc_b = refs[-2][...]
    out_ref = refs[-1]

    B, T, D = x_ref.shape
    H = w_hh0.shape[0]
    G = 4 * H

    # ---- (1) layer-0 input projection hoisted out of the recurrence --------
    # One (B*T, D) @ (D, 4H) MXU push replaces T dependent per-step pushes.
    x_bf = x_ref[...].astype(jnp.bfloat16)
    xg0 = jnp.dot(
        x_bf.reshape(B * T, D), w_ih0, preferred_element_type=jnp.float32
    ).reshape(B, T, G)
    xg0 = xg0 + b0  # (5) layer-0 bias folded in; single broadcast

    # ---- (2)+(5) stacked weights & pre-broadcast biases for layers >= 1 ----
    upper = []
    for l in range(1, num_layers):
        w_stack = refs[4 + 2 * (l - 1)][...]                       # (2H, 4H) bf16
        bias = jnp.broadcast_to(refs[5 + 2 * (l - 1)][...], (B, G))  # hoisted
        upper.append((w_stack, bias))

    h = [jnp.zeros((B, H), jnp.float32) for _ in range(num_layers)]
    c = [jnp.zeros((B, H), jnp.float32) for _ in range(num_layers)]

    def cell_update(gates, c_prev):
        # (4) full-vreg activations: 2 EUP pushes on (B, 4H) instead of 4
        # quarter-width ones, then cheap lane slices for i/f/g/o.
        sig = jax.nn.sigmoid(gates)
        tnh = jnp.tanh(gates)
        i_g = sig[:, 0 * H:1 * H]
        f_g = sig[:, 1 * H:2 * H]
        g_g = tnh[:, 2 * H:3 * H]
        o_g = sig[:, 3 * H:4 * H]
        c_new = f_g * c_prev + i_g * g_g
        h_new = o_g * jnp.tanh(c_new)
        return h_new, c_new

    # Time recurrence fully unrolled at trace time (T static and small).
    for t in range(T):
        # Layer 0: precomputed input gates + recurrent matmul only.
        gates0 = xg0[:, t, :] + jnp.dot(
            h[0].astype(jnp.bfloat16), w_hh0, preferred_element_type=jnp.float32
        )
        h[0], c[0] = cell_update(gates0, c[0])
        inp = h[0]

        # Layers >= 1: single fused [inp, h] @ [W_ih; W_hh] MXU push per step.
        for idx, (w_stack, bias) in enumerate(upper):
            l = idx + 1
            xh = jnp.concatenate([inp, h[l]], axis=-1).astype(jnp.bfloat16)
            gates = jnp.dot(xh, w_stack, preferred_element_type=jnp.float32) + bias
            h[l], c[l] = cell_update(gates, c[l])
            inp = h[l]

    # FC head folded into the epilogue; single small store at the end.
    out_ref[...] = (
        jnp.dot(h[-1].astype(jnp.bfloat16), fc_w, preferred_element_type=jnp.float32)
        + fc_b
    ).astype(out_ref.dtype)


# --------------------------------- wrapper ------------------------------------

def prepare_kernel_inputs(params):
    """Transpose / stack / bf16-cast the f32 parameters into the kernel layout."""
    flat = []
    lstm = params["lstm"]
    w_ih0, w_hh0, b0 = lstm[0]
    flat += [
        w_ih0.T.astype(jnp.bfloat16),            # (D, 4H)
        w_hh0.T.astype(jnp.bfloat16),            # (H, 4H)
        b0.reshape(1, -1).astype(jnp.float32),   # (1, 4H)  (b_ih + b_hh)
    ]
    for (w_ih, w_hh, b) in lstm[1:]:
        w_stack = jnp.concatenate([w_ih.T, w_hh.T], axis=0)  # (2H, 4H)
        flat += [w_stack.astype(jnp.bfloat16), b.reshape(1, -1).astype(jnp.float32)]
    flat += [
        params["fc_w"].T.astype(jnp.bfloat16),          # (H, O*F)
        params["fc_b"].reshape(1, -1).astype(jnp.float32),  # (1, O*F)
    ]
    return flat


def lstm_trajectory_forecast(x, params, forecast_horizon, output_size):
    """x: (B, T, D_in) -> (B, forecast_horizon, output_size)."""
    B, T, D = x.shape
    num_layers = len(params["lstm"])
    OF = params["fc_w"].shape[0]

    flat = prepare_kernel_inputs(params)
    vmem = pl.BlockSpec(memory_space=pltpu.MemorySpace.VMEM)
    out = pl.pallas_call(
        functools.partial(fused_lstm_fc_kernel, num_layers=num_layers),
        out_shape=jax.ShapeDtypeStruct((B, OF), jnp.float32),
        in_specs=[vmem] * (1 + len(flat)),
        out_specs=vmem,
    )(x, *flat)
    return out.reshape(B, forecast_horizon, output_size)


# --------------------------- parameter construction ---------------------------

def xavier_uniform(key, shape_torch):
    """shape_torch = (out_features, in_features); returns torch-shaped array."""
    fan_out, fan_in = shape_torch
    bound = float(np.sqrt(6.0 / (fan_in + fan_out)))
    return jax.random.uniform(key, shape_torch, jnp.float32, -bound, bound)


def init_params(key, cfg):
    D = cfg["lstm_input_shape"]
    H = cfg["lstm_hidden_size"]
    L = cfg["lstm_num_layers"]
    OF = cfg["num_gaussians"] * cfg["output_factor"] * cfg["forecast_horizon"]

    keys = jax.random.split(key, 2 * L + 1)
    lstm_layers = []
    for layer in range(L):
        in_dim = D if layer == 0 else H
        w_ih = xavier_uniform(keys[2 * layer], (4 * H, in_dim))   # torch layout
        w_hh = xavier_uniform(keys[2 * layer + 1], (4 * H, H))    # torch layout
        # Combined bias b_ih + b_hh (both zero at PyTorch init).  When importing
        # real PyTorch weights, sum the two bias vectors here.
        bias = jnp.zeros((4 * H,), jnp.float32)
        lstm_layers.append((w_ih, w_hh, bias))

    fc_w = xavier_uniform(keys[-1], (OF, H))                      # torch layout
    fc_b = jnp.zeros((OF,), jnp.float32)
    return {"lstm": lstm_layers, "fc_w": fc_w, "fc_b": fc_b}


# ------------------------------ pure-JAX reference ----------------------------

def reference_forward(x, params, forecast_horizon, output_size):
    B, T, D = x.shape
    seq = x
    for (w_ih, w_hh, bias) in params["lstm"]:
        H = w_hh.shape[1]
        w_ih_t, w_hh_t = w_ih.T, w_hh.T

        def step(carry, x_t, w_ih_t=w_ih_t, w_hh_t=w_hh_t, bias=bias, H=H):
            h, c = carry
            gates = x_t @ w_ih_t + h @ w_hh_t + bias
            i = jax.nn.sigmoid(gates[:, :H])
            f = jax.nn.sigmoid(gates[:, H:2 * H])
            g = jnp.tanh(gates[:, 2 * H:3 * H])
            o = jax.nn.sigmoid(gates[:, 3 * H:])
            c = f * c + i * g
            h = o * jnp.tanh(c)
            return (h, c), h

        init = (jnp.zeros((B, H), jnp.float32), jnp.zeros((B, H), jnp.float32))
        _, hs = jax.lax.scan(step, init, jnp.transpose(seq, (1, 0, 2)))
        seq = jnp.transpose(hs, (1, 0, 2))
    out = seq[:, -1, :] @ params["fc_w"].T + params["fc_b"]
    return out.reshape(B, forecast_horizon, output_size)


# ----------------------------------- main --------------------------------------

if __name__ == "__main__":
    cfg = {
        "lstm_input_shape": 8,
        "lstm_hidden_size": 32,
        "lstm_num_layers": 2,
        "num_gaussians": 2,
        "output_factor": 2,
        "forecast_horizon": 5,
    }
    B, T = 2, 8
    output_size = cfg["num_gaussians"] * cfg["output_factor"]

    key = jax.random.PRNGKey(0)
    k_param, k_x = jax.random.split(key)
    params = init_params(k_param, cfg)
    x = jax.random.normal(k_x, (B, T, cfg["lstm_input_shape"]), jnp.float32)

    out = lstm_trajectory_forecast(x, params, cfg["forecast_horizon"], output_size)
    out = jax.block_until_ready(out)

    ref = reference_forward(x, params, cfg["forecast_horizon"], output_size)
    assert out.shape == (B, cfg["forecast_horizon"], output_size)
    # Tolerance relaxed vs the pure-f32 version: MXU operands are bf16
    # (f32 accumulation), so matmul inputs lose mantissa bits by design.
    np.testing.assert_allclose(np.asarray(out), np.asarray(ref), rtol=5e-2, atol=5e-2)

    print("KERNEL_OK")
</pallas_src>

<mosaic_0001>
module attributes {stable_mosaic.version = 11 : i64} {
  func.func @fused_lstm_fc_kernel(%arg0: memref<2x8x8xf32, #tpu.memory_space<vmem>>, %arg1: memref<8x128xbf16, #tpu.memory_space<vmem>>, %arg2: memref<32x128xbf16, #tpu.memory_space<vmem>>, %arg3: memref<1x128xf32, #tpu.memory_space<vmem>>, %arg4: memref<64x128xbf16, #tpu.memory_space<vmem>>, %arg5: memref<1x128xf32, #tpu.memory_space<vmem>>, %arg6: memref<32x20xbf16, #tpu.memory_space<vmem>>, %arg7: memref<1x20xf32, #tpu.memory_space<vmem>>, %arg8: memref<2x20xf32, #tpu.memory_space<vmem>>) attributes {dimension_semantics = [], scalar_prefetch = 0 : i64, scratch_operands = 0 : i64, tpu.core_type = #tpu.core_type<tc>} {
    %c0 = arith.constant 0 : index
    %c0_0 = arith.constant 0 : index
    %0 = vector.load %arg1[%c0, %c0_0] : memref<8x128xbf16, #tpu.memory_space<vmem>>, vector<8x128xbf16>
    %c0_1 = arith.constant 0 : index
    %c0_2 = arith.constant 0 : index
    %1 = vector.load %arg2[%c0_1, %c0_2] : memref<32x128xbf16, #tpu.memory_space<vmem>>, vector<32x128xbf16>
    %c0_3 = arith.constant 0 : index
    %c0_4 = arith.constant 0 : index
    %2 = vector.load %arg3[%c0_3, %c0_4] : memref<1x128xf32, #tpu.memory_space<vmem>>, vector<1x128xf32>
    %c0_5 = arith.constant 0 : index
    %c0_6 = arith.constant 0 : index
    %3 = vector.load %arg6[%c0_5, %c0_6] : memref<32x20xbf16, #tpu.memory_space<vmem>>, vector<32x20xbf16>
    %c0_7 = arith.constant 0 : index
    %c0_8 = arith.constant 0 : index
    %4 = vector.load %arg7[%c0_7, %c0_8] : memref<1x20xf32, #tpu.memory_space<vmem>>, vector<1x20xf32>
    %c0_9 = arith.constant 0 : index
    %c0_10 = arith.constant 0 : index
    %c0_11 = arith.constant 0 : index
    %5 = vector.load %arg0[%c0_9, %c0_10, %c0_11] : memref<2x8x8xf32, #tpu.memory_space<vmem>>, vector<2x8x8xf32>
    %6 = arith.truncf %5 : vector<2x8x8xf32> to vector<2x8x8xbf16>
    %7 = vector.shape_cast %6 : vector<2x8x8xbf16> to vector<16x8xbf16>
    %cst = arith.constant dense<0.000000e+00> : vector<16x128xf32>
    %8 = tpu.matmul %7, %0, %cst {dimension_numbers = #tpu.dot_dimension_numbers<[1], [0], [0], [1], [0, 0, 1, 1], [], []>} : vector<16x8xbf16>, vector<8x128xbf16>, vector<16x128xf32> -> vector<16x128xf32>
    %9 = vector.shape_cast %8 : vector<16x128xf32> to vector<2x8x128xf32>
    %10 = vector.shape_cast %2 : vector<1x128xf32> to vector<1x1x128xf32>
    %11 = vector.broadcast %10 : vector<1x1x128xf32> to vector<2x8x128xf32>
    %12 = arith.addf %9, %11 : vector<2x8x128xf32>
    %c0_12 = arith.constant 0 : index
    %c0_13 = arith.constant 0 : index
    %13 = vector.load %arg4[%c0_12, %c0_13] : memref<64x128xbf16, #tpu.memory_space<vmem>>, vector<64x128xbf16>
    %c0_14 = arith.constant 0 : index
    %c0_15 = arith.constant 0 : index
    %14 = vector.load %arg5[%c0_14, %c0_15] : memref<1x128xf32, #tpu.memory_space<vmem>>, vector<1x128xf32>
    %15 = vector.shape_cast %14 : vector<1x128xf32> to vector<1x128xf32>
    %16 = vector.broadcast %15 : vector<1x128xf32> to vector<2x128xf32>
    %cst_16 = arith.constant 0.000000e+00 : f32
    %17 = vector.broadcast %cst_16 : f32 to vector<2x32xf32>
    %cst_17 = arith.constant 0.000000e+00 : f32
    %18 = vector.broadcast %cst_17 : f32 to vector<2x32xf32>
    %cst_18 = arith.constant 0.000000e+00 : f32
    %19 = vector.broadcast %cst_18 : f32 to vector<2x32xf32>
    %cst_19 = arith.constant 0.000000e+00 : f32
    %20 = vector.broadcast %cst_19 : f32 to vector<2x32xf32>
    %21 = vector.extract_strided_slice %12 {offsets = [0, 0, 0], sizes = [2, 1, 128], strides = [1, 1, 1]} : vector<2x8x128xf32> to vector<2x1x128xf32>
    %22 = vector.shape_cast %21 : vector<2x1x128xf32> to vector<2x128xf32>
    %23 = arith.truncf %17 : vector<2x32xf32> to vector<2x32xbf16>
    %cst_20 = arith.constant dense<0.000000e+00> : vector<2x128xf32>
    %24 = tpu.matmul %23, %1, %cst_20 {dimension_numbers = #tpu.dot_dimension_numbers<[1], [0], [0], [1], [0, 0, 1, 1], [], []>} : vector<2x32xbf16>, vector<32x128xbf16>, vector<2x128xf32> -> vector<2x128xf32>
    %25 = arith.addf %22, %24 : vector<2x128xf32>
    %26 = arith.negf %25 : vector<2x128xf32>
    %27 = math.exp %26 : vector<2x128xf32>
    %cst_21 = arith.constant 1.000000e+00 : f32
    %28 = vector.broadcast %cst_21 : f32 to vector<2x128xf32>
    %29 = arith.addf %28, %27 : vector<2x128xf32>
    %30 = arith.divf %28, %29 : vector<2x128xf32>
    %31 = math.tanh %25 : vector<2x128xf32>
    %32 = vector.extract_strided_slice %30 {offsets = [0, 0], sizes = [2, 32], strides = [1, 1]} : vector<2x128xf32> to vector<2x32xf32>
    %33 = vector.extract_strided_slice %30 {offsets = [0, 32], sizes = [2, 32], strides = [1, 1]} : vector<2x128xf32> to vector<2x32xf32>
    %34 = vector.extract_strided_slice %31 {offsets = [0, 64], sizes = [2, 32], strides = [1, 1]} : vector<2x128xf32> to vector<2x32xf32>
    %35 = vector.extract_strided_slice %30 {offsets = [0, 96], sizes = [2, 32], strides = [1, 1]} : vector<2x128xf32> to vector<2x32xf32>
    %36 = arith.mulf %33, %19 : vector<2x32xf32>
    %37 = arith.mulf %32, %34 : vector<2x32xf32>
    %38 = arith.addf %36, %37 : vector<2x32xf32>
    %39 = math.tanh %38 : vector<2x32xf32>
    %40 = arith.mulf %35, %39 : vector<2x32xf32>
    %41 = tpu.concatenate %40, %18 in 1 : vector<2x32xf32>, vector<2x32xf32> -> vector<2x64xf32>
    %42 = arith.truncf %41 : vector<2x64xf32> to vector<2x64xbf16>
    %cst_22 = arith.constant dense<0.000000e+00> : vector<2x128xf32>
    %43 = tpu.matmul %42, %13, %cst_22 {dimension_numbers = #tpu.dot_dimension_numbers<[1], [0], [0], [1], [0, 0, 1, 1], [], []>} : vector<2x64xbf16>, vector<64x128xbf16>, vector<2x128xf32> -> vector<2x128xf32>
    %44 = arith.addf %43, %16 : vector<2x128xf32>
    %45 = arith.negf %44 : vector<2x128xf32>
    %46 = math.exp %45 : vector<2x128xf32>
    %cst_23 = arith.constant 1.000000e+00 : f32
    %47 = vector.broadcast %cst_23 : f32 to vector<2x128xf32>
    %48 = arith.addf %47, %46 : vector<2x128xf32>
    %49 = arith.divf %47, %48 : vector<2x128xf32>
    %50 = math.tanh %44 : vector<2x128xf32>
    %51 = vector.extract_strided_slice %49 {offsets = [0, 0], sizes = [2, 32], strides = [1, 1]} : vector<2x128xf32> to vector<2x32xf32>
    %52 = vector.extract_strided_slice %49 {offsets = [0, 32], sizes = [2, 32], strides = [1, 1]} : vector<2x128xf32> to vector<2x32xf32>
    %53 = vector.extract_strided_slice %50 {offsets = [0, 64], sizes = [2, 32], strides = [1, 1]} : vector<2x128xf32> to vector<2x32xf32>
    %54 = vector.extract_strided_slice %49 {offsets = [0, 96], sizes = [2, 32], strides = [1, 1]} : vector<2x128xf32> to vector<2x32xf32>
    %55 = arith.mulf %52, %20 : vector<2x32xf32>
    %56 = arith.mulf %51, %53 : vector<2x32xf32>
    %57 = arith.addf %55, %56 : vector<2x32xf32>
    %58 = math.tanh %57 : vector<2x32xf32>
    %59 = arith.mulf %54, %58 : vector<2x32xf32>
    %60 = vector.extract_strided_slice %12 {offsets = [0, 1, 0], sizes = [2, 1, 128], strides = [1, 1, 1]} : vector<2x8x128xf32> to vector<2x1x128xf32>
    %61 = vector.shape_cast %60 : vector<2x1x128xf32> to vector<2x128xf32>
    %62 = arith.truncf %40 : vector<2x32xf32> to vector<2x32xbf16>
    %cst_24 = arith.constant dense<0.000000e+00> : vector<2x128xf32>
    %63 = tpu.matmul %62, %1, %cst_24 {dimension_numbers = #tpu.dot_dimension_numbers<[1], [0], [0], [1], [0, 0, 1, 1], [], []>} : vector<2x32xbf16>, vector<32x128xbf16>, vector<2x128xf32> -> vector<2x128xf32>
    %64 = arith.addf %61, %63 : vector<2x128xf32>
    %65 = arith.negf %64 : vector<2x128xf32>
    %66 = math.exp %65 : vector<2x128xf32>
    %cst_25 = arith.constant 1.000000e+00 : f32
    %67 = vector.broadcast %cst_25 : f32 to vector<2x128xf32>
    %68 = arith.addf %67, %66 : vector<2x128xf32>
    %69 = arith.divf %67, %68 : vector<2x128xf32>
    %70 = math.tanh %64 : vector<2x128xf32>
    %71 = vector.extract_strided_slice %69 {offsets = [0, 0], sizes = [2, 32], strides = [1, 1]} : vector<2x128xf32> to vector<2x32xf32>
    %72 = vector.extract_strided_slice %69 {offsets = [0, 32], sizes = [2, 32], strides = [1, 1]} : vector<2x128xf32> to vector<2x32xf32>
    %73 = vector.extract_strided_slice %70 {offsets = [0, 64], sizes = [2, 32], strides = [1, 1]} : vector<2x128xf32> to vector<2x32xf32>
    %74 = vector.extract_strided_slice %69 {offsets = [0, 96], sizes = [2, 32], strides = [1, 1]} : vector<2x128xf32> to vector<2x32xf32>
    %75 = arith.mulf %72, %38 : vector<2x32xf32>
    %76 = arith.mulf %71, %73 : vector<2x32xf32>
    %77 = arith.addf %75, %76 : vector<2x32xf32>
    %78 = math.tanh %77 : vector<2x32xf32>
    %79 = arith.mulf %74, %78 : vector<2x32xf32>
    %80 = tpu.concatenate %79, %59 in 1 : vector<2x32xf32>, vector<2x32xf32> -> vector<2x64xf32>
    %81 = arith.truncf %80 : vector<2x64xf32> to vector<2x64xbf16>
    %cst_26 = arith.constant dense<0.000000e+00> : vector<2x128xf32>
    %82 = tpu.matmul %81, %13, %cst_26 {dimension_numbers = #tpu.dot_dimension_numbers<[1], [0], [0], [1], [0, 0, 1, 1], [], []>} : vector<2x64xbf16>, vector<64x128xbf16>, vector<2x128xf32> -> vector<2x128xf32>
    %83 = arith.addf %82, %16 : vector<2x128xf32>
    %84 = arith.negf %83 : vector<2x128xf32>
    %85 = math.exp %84 : vector<2x128xf32>
    %cst_27 = arith.constant 1.000000e+00 : f32
    %86 = vector.broadcast %cst_27 : f32 to vector<2x128xf32>
    %87 = arith.addf %86, %85 : vector<2x128xf32>
    %88 = arith.divf %86, %87 : vector<2x128xf32>
    %89 = math.tanh %83 : vector<2x128xf32>
    %90 = vector.extract_strided_slice %88 {offsets = [0, 0], sizes = [2, 32], strides = [1, 1]} : vector<2x128xf32> to vector<2x32xf32>
    %91 = vector.extract_strided_slice %88 {offsets = [0, 32], sizes = [2, 32], strides = [1, 1]} : vector<2x128xf32> to vector<2x32xf32>
    %92 = vector.extract_strided_slice %89 {offsets = [0, 64], sizes = [2, 32], strides = [1, 1]} : vector<2x128xf32> to vector<2x32xf32>
    %93 = vector.extract_strided_slice %88 {offsets = [0, 96], sizes = [2, 32], strides = [1, 1]} : vector<2x128xf32> to vector<2x32xf32>
    %94 = arith.mulf %91, %57 : vector<2x32xf32>
    %95 = arith.mulf %90, %92 : vector<2x32xf32>
    %96 = arith.addf %94, %95 : vector<2x32xf32>
    %97 = math.tanh %96 : vector<2x32xf32>
    %98 = arith.mulf %93, %97 : vector<2x32xf32>
    %99 = vector.extract_strided_slice %12 {offsets = [0, 2, 0], sizes = [2, 1, 128], strides = [1, 1, 1]} : vector<2x8x128xf32> to vector<2x1x128xf32>
    %100 = vector.shape_cast %99 : vector<2x1x128xf32> to vector<2x128xf32>
    %101 = arith.truncf %79 : vector<2x32xf32> to vector<2x32xbf16>
    %cst_28 = arith.constant dense<0.000000e+00> : vector<2x128xf32>
    %102 = tpu.matmul %101, %1, %cst_28 {dimension_numbers = #tpu.dot_dimension_numbers<[1], [0], [0], [1], [0, 0, 1, 1], [], []>} : vector<2x32xbf16>, vector<32x128xbf16>, vector<2x128xf32> -> vector<2x128xf32>
    %103 = arith.addf %100, %102 : vector<2x128xf32>
    %104 = arith.negf %103 : vector<2x128xf32>
    %105 = math.exp %104 : vector<2x128xf32>
    %cst_29 = arith.constant 1.000000e+00 : f32
    %106 = vector.broadcast %cst_29 : f32 to vector<2x128xf32>
    %107 = arith.addf %106, %105 : vector<2x128xf32>
    %108 = arith.divf %106, %107 : vector<2x128xf32>
    %109 = math.tanh %103 : vector<2x128xf32>
    %110 = vector.extract_strided_slice %108 {offsets = [0, 0], sizes = [2, 32], strides = [1, 1]} : vector<2x128xf32> to vector<2x32xf32>
    %111 = vector.extract_strided_slice %108 {offsets = [0, 32], sizes = [2, 32], strides = [1, 1]} : vector<2x128xf32> to vector<2x32xf32>
    %112 = vector.extract_strided_slice %109 {offsets = [0, 64], sizes = [2, 32], strides = [1, 1]} : vector<2x128xf32> to vector<2x32xf32>
    %113 = vector.extract_strided_slice %108 {offsets = [0, 96], sizes = [2, 32], strides = [1, 1]} : vector<2x128xf32> to vector<2x32xf32>
    %114 = arith.mulf %111, %77 : vector<2x32xf32>
    %115 = arith.mulf %110, %112 : vector<2x32xf32>
    %116 = arith.addf %114, %115 : vector<2x32xf32>
    %117 = math.tanh %116 : vector<2x32xf32>
    %118 = arith.mulf %113, %117 : vector<2x32xf32>
    %119 = tpu.concatenate %118, %98 in 1 : vector<2x32xf32>, vector<2x32xf32> -> vector<2x64xf32>
    %120 = arith.truncf %119 : vector<2x64xf32> to vector<2x64xbf16>
    %cst_30 = arith.constant dense<0.000000e+00> : vector<2x128xf32>
    %121 = tpu.matmul %120, %13, %cst_30 {dimension_numbers = #tpu.dot_dimension_numbers<[1], [0], [0], [1], [0, 0, 1, 1], [], []>} : vector<2x64xbf16>, vector<64x128xbf16>, vector<2x128xf32> -> vector<2x128xf32>
    %122 = arith.addf %121, %16 : vector<2x128xf32>
    %123 = arith.negf %122 : vector<2x128xf32>
    %124 = math.exp %123 : vector<2x128xf32>
    %cst_31 = arith.constant 1.000000e+00 : f32
    %125 = vector.broadcast %cst_31 : f32 to vector<2x128xf32>
    %126 = arith.addf %125, %124 : vector<2x128xf32>
    %127 = arith.divf %125, %126 : vector<2x128xf32>
    %128 = math.tanh %122 : vector<2x128xf32>
    %129 = vector.extract_strided_slice %127 {offsets = [0, 0], sizes = [2, 32], strides = [1, 1]} : vector<2x128xf32> to vector<2x32xf32>
    %130 = vector.extract_strided_slice %127 {offsets = [0, 32], sizes = [2, 32], strides = [1, 1]} : vector<2x128xf32> to vector<2x32xf32>
    %131 = vector.extract_strided_slice %128 {offsets = [0, 64], sizes = [2, 32], strides = [1, 1]} : vector<2x128xf32> to vector<2x32xf32>
    %132 = vector.extract_strided_slice %127 {offsets = [0, 96], sizes = [2, 32], strides = [1, 1]} : vector<2x128xf32> to vector<2x32xf32>
    %133 = arith.mulf %130, %96 : vector<2x32xf32>
    %134 = arith.mulf %129, %131 : vector<2x32xf32>
    %135 = arith.addf %133, %134 : vector<2x32xf32>
    %136 = math.tanh %135 : vector<2x32xf32>
    %137 = arith.mulf %132, %136 : vector<2x32xf32>
    %138 = vector.extract_strided_slice %12 {offsets = [0, 3, 0], sizes = [2, 1, 128], strides = [1, 1, 1]} : vector<2x8x128xf32> to vector<2x1x128xf32>
    %139 = vector.shape_cast %138 : vector<2x1x128xf32> to vector<2x128xf32>
    %140 = arith.truncf %118 : vector<2x32xf32> to vector<2x32xbf16>
    %cst_32 = arith.constant dense<0.000000e+00> : vector<2x128xf32>
    %141 = tpu.matmul %140, %1, %cst_32 {dimension_numbers = #tpu.dot_dimension_numbers<[1], [0], [0], [1], [0, 0, 1, 1], [], []>} : vector<2x32xbf16>, vector<32x128xbf16>, vector<2x128xf32> -> vector<2x128xf32>
    %142 = arith.addf %139, %141 : vector<2x128xf32>
    %143 = arith.negf %142 : vector<2x128xf32>
    %144 = math.exp %143 : vector<2x128xf32>
    %cst_33 = arith.constant 1.000000e+00 : f32
    %145 = vector.broadcast %cst_33 : f32 to vector<2x128xf32>
    %146 = arith.addf %145, %144 : vector<2x128xf32>
    %147 = arith.divf %145, %146 : vector<2x128xf32>
    %148 = math.tanh %142 : vector<2x128xf32>
    %149 = vector.extract_strided_slice %147 {offsets = [0, 0], sizes = [2, 32], strides = [1, 1]} : vector<2x128xf32> to vector<2x32xf32>
    %150 = vector.extract_strided_slice %147 {offsets = [0, 32], sizes = [2, 32], strides = [1, 1]} : vector<2x128xf32> to vector<2x32xf32>
    %151 = vector.extract_strided_slice %148 {offsets = [0, 64], sizes = [2, 32], strides = [1, 1]} : vector<2x128xf32> to vector<2x32xf32>
    %152 = vector.extract_strided_slice %147 {offsets = [0, 96], sizes = [2, 32], strides = [1, 1]} : vector<2x128xf32> to vector<2x32xf32>
    %153 = arith.mulf %150, %116 : vector<2x32xf32>
    %154 = arith.mulf %149, %151 : vector<2x32xf32>
    %155 = arith.addf %153, %154 : vector<2x32xf32>
    %156 = math.tanh %155 : vector<2x32xf32>
    %157 = arith.mulf %152, %156 : vector<2x32xf32>
    %158 = tpu.concatenate %157, %137 in 1 : vector<2x32xf32>, vector<2x32xf32> -> vector<2x64xf32>
    %159 = arith.truncf %158 : vector<2x64xf32> to vector<2x64xbf16>
    %cst_34 = arith.constant dense<0.000000e+00> : vector<2x128xf32>
    %160 = tpu.matmul %159, %13, %cst_34 {dimension_numbers = #tpu.dot_dimension_numbers<[1], [0], [0], [1], [0, 0, 1, 1], [], []>} : vector<2x64xbf16>, vector<64x128xbf16>, vector<2x128xf32> -> vector<2x128xf32>
    %161 = arith.addf %160, %16 : vector<2x128xf32>
    %162 = arith.negf %161 : vector<2x128xf32>
    %163 = math.exp %162 : vector<2x128xf32>
    %cst_35 = arith.constant 1.000000e+00 : f32
    %164 = vector.broadcast %cst_35 : f32 to vector<2x128xf32>
    %165 = arith.addf %164, %163 : vector<2x128xf32>
    %166 = arith.divf %164, %165 : vector<2x128xf32>
    %167 = math.tanh %161 : vector<2x128xf32>
    %168 = vector.extract_strided_slice %166 {offsets = [0, 0], sizes = [2, 32], strides = [1, 1]} : vector<2x128xf32> to vector<2x32xf32>
    %169 = vector.extract_strided_slice %166 {offsets = [0, 32], sizes = [2, 32], strides = [1, 1]} : vector<2x128xf32> to vector<2x32xf32>
    %170 = vector.extract_strided_slice %167 {offsets = [0, 64], sizes = [2, 32], strides = [1, 1]} : vector<2x128xf32> to vector<2x32xf32>
    %171 = vector.extract_strided_slice %166 {offsets = [0, 96], sizes = [2, 32], strides = [1, 1]} : vector<2x128xf32> to vector<2x32xf32>
    %172 = arith.mulf %169, %135 : vector<2x32xf32>
    %173 = arith.mulf %168, %170 : vector<2x32xf32>
    %174 = arith.addf %172, %173 : vector<2x32xf32>
    %175 = math.tanh %174 : vector<2x32xf32>
    %176 = arith.mulf %171, %175 : vector<2x32xf32>
    %177 = vector.extract_strided_slice %12 {offsets = [0, 4, 0], sizes = [2, 1, 128], strides = [1, 1, 1]} : vector<2x8x128xf32> to vector<2x1x128xf32>
    %178 = vector.shape_cast %177 : vector<2x1x128xf32> to vector<2x128xf32>
    %179 = arith.truncf %157 : vector<2x32xf32> to vector<2x32xbf16>
    %cst_36 = arith.constant dense<0.000000e+00> : vector<2x128xf32>
    %180 = tpu.matmul %179, %1, %cst_36 {dimension_numbers = #tpu.dot_dimension_numbers<[1], [0], [0], [1], [0, 0, 1, 1], [], []>} : vector<2x32xbf16>, vector<32x128xbf16>, vector<2x128xf32> -> vector<2x128xf32>
    %181 = arith.addf %178, %180 : vector<2x128xf32>
    %182 = arith.negf %181 : vector<2x128xf32>
    %183 = math.exp %182 : vector<2x128xf32>
    %cst_37 = arith.constant 1.000000e+00 : f32
    %184 = vector.broadcast %cst_37 : f32 to vector<2x128xf32>
    %185 = arith.addf %184, %183 : vector<2x128xf32>
    %186 = arith.divf %184, %185 : vector<2x128xf32>
    %187 = math.tanh %181 : vector<2x128xf32>
    %188 = vector.extract_strided_slice %186 {offsets = [0, 0], sizes = [2, 32], strides = [1, 1]} : vector<2x128xf32> to vector<2x32xf32>
    %189 = vector.extract_strided_slice %186 {offsets = [0, 32], sizes = [2, 32], strides = [1, 1]} : vector<2x128xf32> to vector<2x32xf32>
    %190 = vector.extract_strided_slice %187 {offsets = [0, 64], sizes = [2, 32], strides = [1, 1]} : vector<2x128xf32> to vector<2x32xf32>
    %191 = vector.extract_strided_slice %186 {offsets = [0, 96], sizes = [2, 32], strides = [1, 1]} : vector<2x128xf32> to vector<2x32xf32>
    %192 = arith.mulf %189, %155 : vector<2x32xf32>
    %193 = arith.mulf %188, %190 : vector<2x32xf32>
    %194 = arith.addf %192, %193 : vector<2x32xf32>
    %195 = math.tanh %194 : vector<2x32xf32>
    %196 = arith.mulf %191, %195 : vector<2x32xf32>
    %197 = tpu.concatenate %196, %176 in 1 : vector<2x32xf32>, vector<2x32xf32> -> vector<2x64xf32>
    %198 = arith.truncf %197 : vector<2x64xf32> to vector<2x64xbf16>
    %cst_38 = arith.constant dense<0.000000e+00> : vector<2x128xf32>
    %199 = tpu.matmul %198, %13, %cst_38 {dimension_numbers = #tpu.dot_dimension_numbers<[1], [0], [0], [1], [0, 0, 1, 1], [], []>} : vector<2x64xbf16>, vector<64x128xbf16>, vector<2x128xf32> -> vector<2x128xf32>
    %200 = arith.addf %199, %16 : vector<2x128xf32>
    %201 = arith.negf %200 : vector<2x128xf32>
    %202 = math.exp %201 : vector<2x128xf32>
    %cst_39 = arith.constant 1.000000e+00 : f32
    %203 = vector.broadcast %cst_39 : f32 to vector<2x128xf32>
    %204 = arith.addf %203, %202 : vector<2x128xf32>
    %205 = arith.divf %203, %204 : vector<2x128xf32>
    %206 = math.tanh %200 : vector<2x128xf32>
    %207 = vector.extract_strided_slice %205 {offsets = [0, 0], sizes = [2, 32], strides = [1, 1]} : vector<2x128xf32> to vector<2x32xf32>
    %208 = vector.extract_strided_slice %205 {offsets = [0, 32], sizes = [2, 32], strides = [1, 1]} : vector<2x128xf32> to vector<2x32xf32>
    %209 = vector.extract_strided_slice %206 {offsets = [0, 64], sizes = [2, 32], strides = [1, 1]} : vector<2x128xf32> to vector<2x32xf32>
    %210 = vector.extract_strided_slice %205 {offsets = [0, 96], sizes = [2, 32], strides = [1, 1]} : vector<2x128xf32> to vector<2x32xf32>
    %211 = arith.mulf %208, %174 : vector<2x32xf32>
    %212 = arith.mulf %207, %209 : vector<2x32xf32>
    %213 = arith.addf %211, %212 : vector<2x32xf32>
    %214 = math.tanh %213 : vector<2x32xf32>
    %215 = arith.mulf %210, %214 : vector<2x32xf32>
    %216 = vector.extract_strided_slice %12 {offsets = [0, 5, 0], sizes = [2, 1, 128], strides = [1, 1, 1]} : vector<2x8x128xf32> to vector<2x1x128xf32>
    %217 = vector.shape_cast %216 : vector<2x1x128xf32> to vector<2x128xf32>
    %218 = arith.truncf %196 : vector<2x32xf32> to vector<2x32xbf16>
    %cst_40 = arith.constant dense<0.000000e+00> : vector<2x128xf32>
    %219 = tpu.matmul %218, %1, %cst_40 {dimension_numbers = #tpu.dot_dimension_numbers<[1], [0], [0], [1], [0, 0, 1, 1], [], []>} : vector<2x32xbf16>, vector<32x128xbf16>, vector<2x128xf32> -> vector<2x128xf32>
    %220 = arith.addf %217, %219 : vector<2x128xf32>
    %221 = arith.negf %220 : vector<2x128xf32>
    %222 = math.exp %221 : vector<2x128xf32>
    %cst_41 = arith.constant 1.000000e+00 : f32
    %223 = vector.broadcast %cst_41 : f32 to vector<2x128xf32>
    %224 = arith.addf %223, %222 : vector<2x128xf32>
    %225 = arith.divf %223, %224 : vector<2x128xf32>
    %226 = math.tanh %220 : vector<2x128xf32>
    %227 = vector.extract_strided_slice %225 {offsets = [0, 0], sizes = [2, 32], strides = [1, 1]} : vector<2x128xf32> to vector<2x32xf32>
    %228 = vector.extract_strided_slice %225 {offsets = [0, 32], sizes = [2, 32], strides = [1, 1]} : vector<2x128xf32> to vector<2x32xf32>
    %229 = vector.extract_strided_slice %226 {offsets = [0, 64], sizes = [2, 32], strides = [1, 1]} : vector<2x128xf32> to vector<2x32xf32>
    %230 = vector.extract_strided_slice %225 {offsets = [0, 96], sizes = [2, 32], strides = [1, 1]} : vector<2x128xf32> to vector<2x32xf32>
    %231 = arith.mulf %228, %194 : vector<2x32xf32>
    %232 = arith.mulf %227, %229 : vector<2x32xf32>
    %233 = arith.addf %231, %232 : vector<2x32xf32>
    %234 = math.tanh %233 : vector<2x32xf32>
    %235 = arith.mulf %230, %234 : vector<2x32xf32>
    %236 = tpu.concatenate %235, %215 in 1 : vector<2x32xf32>, vector<2x32xf32> -> vector<2x64xf32>
    %237 = arith.truncf %236 : vector<2x64xf32> to vector<2x64xbf16>
    %cst_42 = arith.constant dense<0.000000e+00> : vector<2x128xf32>
    %238 = tpu.matmul %237, %13, %cst_42 {dimension_numbers = #tpu.dot_dimension_numbers<[1], [0], [0], [1], [0, 0, 1, 1], [], []>} : vector<2x64xbf16>, vector<64x128xbf16>, vector<2x128xf32> -> vector<2x128xf32>
    %239 = arith.addf %238, %16 : vector<2x128xf32>
    %240 = arith.negf %239 : vector<2x128xf32>
    %241 = math.exp %240 : vector<2x128xf32>
    %cst_43 = arith.constant 1.000000e+00 : f32
    %242 = vector.broadcast %cst_43 : f32 to vector<2x128xf32>
    %243 = arith.addf %242, %241 : vector<2x128xf32>
    %244 = arith.divf %242, %243 : vector<2x128xf32>
    %245 = math.tanh %239 : vector<2x128xf32>
    %246 = vector.extract_strided_slice %244 {offsets = [0, 0], sizes = [2, 32], strides = [1, 1]} : vector<2x128xf32> to vector<2x32xf32>
    %247 = vector.extract_strided_slice %244 {offsets = [0, 32], sizes = [2, 32], strides = [1, 1]} : vector<2x128xf32> to vector<2x32xf32>
    %248 = vector.extract_strided_slice %245 {offsets = [0, 64], sizes = [2, 32], strides = [1, 1]} : vector<2x128xf32> to vector<2x32xf32>
    %249 = vector.extract_strided_slice %244 {offsets = [0, 96], sizes = [2, 32], strides = [1, 1]} : vector<2x128xf32> to vector<2x32xf32>
    %250 = arith.mulf %247, %213 : vector<2x32xf32>
    %251 = arith.mulf %246, %248 : vector<2x32xf32>
    %252 = arith.addf %250, %251 : vector<2x32xf32>
    %253 = math.tanh %252 : vector<2x32xf32>
    %254 = arith.mulf %249, %253 : vector<2x32xf32>
    %255 = vector.extract_strided_slice %12 {offsets = [0, 6, 0], sizes = [2, 1, 128], strides = [1, 1, 1]} : vector<2x8x128xf32> to vector<2x1x128xf32>
    %256 = vector.shape_cast %255 : vector<2x1x128xf32> to vector<2x128xf32>
    %257 = arith.truncf %235 : vector<2x32xf32> to vector<2x32xbf16>
    %cst_44 = arith.constant dense<0.000000e+00> : vector<2x128xf32>
    %258 = tpu.matmul %257, %1, %cst_44 {dimension_numbers = #tpu.dot_dimension_numbers<[1], [0], [0], [1], [0, 0, 1, 1], [], []>} : vector<2x32xbf16>, vector<32x128xbf16>, vector<2x128xf32> -> vector<2x128xf32>
    %259 = arith.addf %256, %258 : vector<2x128xf32>
    %260 = arith.negf %259 : vector<2x128xf32>
    %261 = math.exp %260 : vector<2x128xf32>
    %cst_45 = arith.constant 1.000000e+00 : f32
    %262 = vector.broadcast %cst_45 : f32 to vector<2x128xf32>
    %263 = arith.addf %262, %261 : vector<2x128xf32>
    %264 = arith.divf %262, %263 : vector<2x128xf32>
    %265 = math.tanh %259 : vector<2x128xf32>
    %266 = vector.extract_strided_slice %264 {offsets = [0, 0], sizes = [2, 32], strides = [1, 1]} : vector<2x128xf32> to vector<2x32xf32>
    %267 = vector.extract_strided_slice %264 {offsets = [0, 32], sizes = [2, 32], strides = [1, 1]} : vector<2x128xf32> to vector<2x32xf32>
    %268 = vector.extract_strided_slice %265 {offsets = [0, 64], sizes = [2, 32], strides = [1, 1]} : vector<2x128xf32> to vector<2x32xf32>
    %269 = vector.extract_strided_slice %264 {offsets = [0, 96], sizes = [2, 32], strides = [1, 1]} : vector<2x128xf32> to vector<2x32xf32>
    %270 = arith.mulf %267, %233 : vector<2x32xf32>
    %271 = arith.mulf %266, %268 : vector<2x32xf32>
    %272 = arith.addf %270, %271 : vector<2x32xf32>
    %273 = math.tanh %272 : vector<2x32xf32>
    %274 = arith.mulf %269, %273 : vector<2x32xf32>
    %275 = tpu.concatenate %274, %254 in 1 : vector<2x32xf32>, vector<2x32xf32> -> vector<2x64xf32>
    %276 = arith.truncf %275 : vector<2x64xf32> to vector<2x64xbf16>
    %cst_46 = arith.constant dense<0.000000e+00> : vector<2x128xf32>
    %277 = tpu.matmul %276, %13, %cst_46 {dimension_numbers = #tpu.dot_dimension_numbers<[1], [0], [0], [1], [0, 0, 1, 1], [], []>} : vector<2x64xbf16>, vector<64x128xbf16>, vector<2x128xf32> -> vector<2x128xf32>
    %278 = arith.addf %277, %16 : vector<2x128xf32>
    %279 = arith.negf %278 : vector<2x128xf32>
    %280 = math.exp %279 : vector<2x128xf32>
    %cst_47 = arith.constant 1.000000e+00 : f32
    %281 = vector.broadcast %cst_47 : f32 to vector<2x128xf32>
    %282 = arith.addf %281, %280 : vector<2x128xf32>
    %283 = arith.divf %281, %282 : vector<2x128xf32>
    %284 = math.tanh %278 : vector<2x128xf32>
    %285 = vector.extract_strided_slice %283 {offsets = [0, 0], sizes = [2, 32], strides = [1, 1]} : vector<2x128xf32> to vector<2x32xf32>
    %286 = vector.extract_strided_slice %283 {offsets = [0, 32], sizes = [2, 32], strides = [1, 1]} : vector<2x128xf32> to vector<2x32xf32>
    %287 = vector.extract_strided_slice %284 {offsets = [0, 64], sizes = [2, 32], strides = [1, 1]} : vector<2x128xf32> to vector<2x32xf32>
    %288 = vector.extract_strided_slice %283 {offsets = [0, 96], sizes = [2, 32], strides = [1, 1]} : vector<2x128xf32> to vector<2x32xf32>
    %289 = arith.mulf %286, %252 : vector<2x32xf32>
    %290 = arith.mulf %285, %287 : vector<2x32xf32>
    %291 = arith.addf %289, %290 : vector<2x32xf32>
    %292 = math.tanh %291 : vector<2x32xf32>
    %293 = arith.mulf %288, %292 : vector<2x32xf32>
    %294 = vector.extract_strided_slice %12 {offsets = [0, 7, 0], sizes = [2, 1, 128], strides = [1, 1, 1]} : vector<2x8x128xf32> to vector<2x1x128xf32>
    %295 = vector.shape_cast %294 : vector<2x1x128xf32> to vector<2x128xf32>
    %296 = arith.truncf %274 : vector<2x32xf32> to vector<2x32xbf16>
    %cst_48 = arith.constant dense<0.000000e+00> : vector<2x128xf32>
    %297 = tpu.matmul %296, %1, %cst_48 {dimension_numbers = #tpu.dot_dimension_numbers<[1], [0], [0], [1], [0, 0, 1, 1], [], []>} : vector<2x32xbf16>, vector<32x128xbf16>, vector<2x128xf32> -> vector<2x128xf32>
    %298 = arith.addf %295, %297 : vector<2x128xf32>
    %299 = arith.negf %298 : vector<2x128xf32>
    %300 = math.exp %299 : vector<2x128xf32>
    %cst_49 = arith.constant 1.000000e+00 : f32
    %301 = vector.broadcast %cst_49 : f32 to vector<2x128xf32>
    %302 = arith.addf %301, %300 : vector<2x128xf32>
    %303 = arith.divf %301, %302 : vector<2x128xf32>
    %304 = math.tanh %298 : vector<2x128xf32>
    %305 = vector.extract_strided_slice %303 {offsets = [0, 0], sizes = [2, 32], strides = [1, 1]} : vector<2x128xf32> to vector<2x32xf32>
    %306 = vector.extract_strided_slice %303 {offsets = [0, 32], sizes = [2, 32], strides = [1, 1]} : vector<2x128xf32> to vector<2x32xf32>
    %307 = vector.extract_strided_slice %304 {offsets = [0, 64], sizes = [2, 32], strides = [1, 1]} : vector<2x128xf32> to vector<2x32xf32>
    %308 = vector.extract_strided_slice %303 {offsets = [0, 96], sizes = [2, 32], strides = [1, 1]} : vector<2x128xf32> to vector<2x32xf32>
    %309 = arith.mulf %306, %272 : vector<2x32xf32>
    %310 = arith.mulf %305, %307 : vector<2x32xf32>
    %311 = arith.addf %309, %310 : vector<2x32xf32>
    %312 = math.tanh %311 : vector<2x32xf32>
    %313 = arith.mulf %308, %312 : vector<2x32xf32>
    %314 = tpu.concatenate %313, %293 in 1 : vector<2x32xf32>, vector<2x32xf32> -> vector<2x64xf32>
    %315 = arith.truncf %314 : vector<2x64xf32> to vector<2x64xbf16>
    %cst_50 = arith.constant dense<0.000000e+00> : vector<2x128xf32>
    %316 = tpu.matmul %315, %13, %cst_50 {dimension_numbers = #tpu.dot_dimension_numbers<[1], [0], [0], [1], [0, 0, 1, 1], [], []>} : vector<2x64xbf16>, vector<64x128xbf16>, vector<2x128xf32> -> vector<2x128xf32>
    %317 = arith.addf %316, %16 : vector<2x128xf32>
    %318 = arith.negf %317 : vector<2x128xf32>
    %319 = math.exp %318 : vector<2x128xf32>
    %cst_51 = arith.constant 1.000000e+00 : f32
    %320 = vector.broadcast %cst_51 : f32 to vector<2x128xf32>
    %321 = arith.addf %320, %319 : vector<2x128xf32>
    %322 = arith.divf %320, %321 : vector<2x128xf32>
    %323 = math.tanh %317 : vector<2x128xf32>
    %324 = vector.extract_strided_slice %322 {offsets = [0, 0], sizes = [2, 32], strides = [1, 1]} : vector<2x128xf32> to vector<2x32xf32>
    %325 = vector.extract_strided_slice %322 {offsets = [0, 32], sizes = [2, 32], strides = [1, 1]} : vector<2x128xf32> to vector<2x32xf32>
    %326 = vector.extract_strided_slice %323 {offsets = [0, 64], sizes = [2, 32], strides = [1, 1]} : vector<2x128xf32> to vector<2x32xf32>
    %327 = vector.extract_strided_slice %322 {offsets = [0, 96], sizes = [2, 32], strides = [1, 1]} : vector<2x128xf32> to vector<2x32xf32>
    %328 = arith.mulf %325, %291 : vector<2x32xf32>
    %329 = arith.mulf %324, %326 : vector<2x32xf32>
    %330 = arith.addf %328, %329 : vector<2x32xf32>
    %331 = math.tanh %330 : vector<2x32xf32>
    %332 = arith.mulf %327, %331 : vector<2x32xf32>
    %333 = arith.truncf %332 : vector<2x32xf32> to vector<2x32xbf16>
    %cst_52 = arith.constant dense<0.000000e+00> : vector<2x20xf32>
    %334 = tpu.matmul %333, %3, %cst_52 {dimension_numbers = #tpu.dot_dimension_numbers<[1], [0], [0], [1], [0, 0, 1, 1], [], []>} : vector<2x32xbf16>, vector<32x20xbf16>, vector<2x20xf32> -> vector<2x20xf32>
    %335 = vector.broadcast %4 : vector<1x20xf32> to vector<2x20xf32>
    %336 = arith.addf %334, %335 : vector<2x20xf32>
    %c0_53 = arith.constant 0 : index
    %c0_54 = arith.constant 0 : index
    %337 = vector.load %arg8[%c0_53, %c0_54] : memref<2x20xf32, #tpu.memory_space<vmem>>, vector<2x20xf32>
    tpu.vector_store %arg8[%c0_53, %c0_54], %336 {strides = array<i32>} : memref<2x20xf32, #tpu.memory_space<vmem>>, vector<2x20xf32>,
    return
  }
}

</mosaic_0001>

<bundles_post_ra>
// kernel: tpu_custom_call.1
= control target key start
LH: loop header
LB: loop body
LE: loop exit
PB: predicated region body
PF: predicated region fallthrough
CT: control target
= control target key end

     0   :  { %13 = vsyncpa [#allocation3], 0  ;;  %s2998_s0 = inlined_call_operand.hbm [shape: f32[2,8,8], index: 0, kind: input, shape index: {}]   ;;  %s2999_s1 = inlined_call_operand.vmem [shape: bf16[8,128], index: 1, kind: input, shape index: {}]   ;;  %s3000_s2 = inlined_call_operand.hbm [shape: bf16[32,128], index: 2, kind: input, shape index: {}]   ;;  %s3001_s3 = inlined_call_operand.vmem [shape: f32[1,128], index: 3, kind: input, shape index: {}]   ;;  %s3002_s4 = inlined_call_operand.vmem [shape: bf16[64,128], index: 4, kind: input, shape index: {}]   ;;  %s3003_s5 = inlined_call_operand.vmem [shape: f32[1,128], index: 5, kind: input, shape index: {}]   ;;  %s3004_s6 = inlined_call_operand.vmem [shape: bf16[32,20], index: 6, kind: input, shape index: {}]   ;;  %s3005_s7 = inlined_call_operand.vmem [shape: f32[1,20], index: 7, kind: input, shape index: {}]   ;;  %s3006_s8 = inlined_call_operand.hbm [shape: f32[2,20], index: 8, kind: output, shape index: {}]  }
   0x1   :  { %14 = vsyncpa [#allocation6], 0 }
   0x2   :  { %15 = vsyncpa [#allocation4], 0  ;;  %s2460_s27 = smov [#allocation2]   ;;  %s2388_s9 = scalar_lea.hbm %s2998_s0, 256 }
   0x3   :  { %s21_s28 = sshll.u32 %s2460_s27, 4  ;;  %p2389_p0 = scmp.ne.s32.totalorder %s2998_s0, %s2388_s9  ;;  %s22_s28 = int_to_ptr.vmem [resolvable:$true] %s21_s28 }
   0x4   :  { %p2392_p1 = scmp.lt.u32.totalorder %s2388_s9, %s2998_s0 }
   0x6   :  { %p2394_p2 = pnand %p2392_p1, %p2389_p0 }
   0x8   :  { %2397 = shalt.err (!%p2394_p2)
}
   0x9   :  { %s2398_s14 = scalar_lea.vmem %s22_s28, 256  ;;  %p2403_p4 = scmp.lt.s32.totalorder %s22_s28, %s22_s28 }
   0xa   :  { %p2399_p3 = scmp.ne.s32.totalorder %s22_s28, %s2398_s14  ;;  %p2404_p5 = scmp.lt.s32.totalorder %s2398_s14, %s2398_s14 }
   0xc   :  { %p2405_p6 = por %p2404_p5, %p2403_p4 }
   0xe   :  { %p2406_p7 = pnand %p2405_p6, %p2399_p3 }
  0x10   :  { %2409 = shalt.err (!%p2406_p7)
}
  0x11   :  { %s2461_s15 = smov 128   ;;  %s2462_s16 = smov 8  }
  0x12   :  { %27 = dma.hbm_to_vmem [thread:$0]  %s2998_s0, 256, %s22_s28, [#allocation3], %s2461_s15, %s2461_s15, %s2462_s16  }
  0x13   :  { %s2463_s19 = smov [#allocation5]   ;;  %s2410_s23 = scalar_lea.hbm %s3000_s2, 256 }
  0x14   :  { %s35_s20 = sshll.u32 %s2463_s19, 4  ;;  %p2411_p8 = scmp.ne.s32.totalorder %s3000_s2, %s2410_s23  ;;  %s36_s20 = int_to_ptr.vmem [resolvable:$true] %s35_s20 }
  0x15   :  { %p2414_p9 = scmp.lt.u32.totalorder %s2410_s23, %s3000_s2 }
  0x17   :  { %p2416_p10 = pnand %p2414_p9, %p2411_p8 }
  0x19   :  { %2419 = shalt.err (!%p2416_p10)
}
  0x1a   :  { %s2420_s29 = scalar_lea.vmem %s36_s20, 256  ;;  %p2425_p12 = scmp.lt.s32.totalorder %s36_s20, %s36_s20 }
  0x1b   :  { %p2421_p11 = scmp.ne.s32.totalorder %s36_s20, %s2420_s29  ;;  %p2426_p13 = scmp.lt.s32.totalorder %s2420_s29, %s2420_s29 }
  0x1d   :  { %p2427_p0 = por %p2426_p13, %p2425_p12 }
  0x1f   :  { %p2428_p1 = pnand %p2427_p0, %p2421_p11 }
  0x21   :  { %2431 = shalt.err (!%p2428_p1)
}
  0x22   :  { %s2464_s0 = smov 64   ;;  %s2465_s28 = smov 4  }
  0x23   :  { %41 = dma.hbm_to_vmem [thread:$0]  %s3000_s2, 256, %s36_s20, [#allocation6], %s2464_s0, %s2464_s0, %s2465_s28  }
  0x24   :  { %2454 = dma.done.wait [#allocation3], 256  }
  0x25   :  { %2455 = vsyncadd [#allocation3], 4294967040 }
  0x26   :  { %2456 = dma.done.wait [#allocation6], 256  }
  0x27   :  { %2457 = vsyncadd [#allocation6], 4294967040  ;;  %v2466_v0 = vmov 0.0   ;;  %vm2467_vm0 = vmmov 0   ;;  %vm83_vm1 = vcmask 1043456   ;;  %v2551_v3 = vld [vmem:[#allocation5] sm:$0xff]  }
  0x28   :  { %1991 = vmatprep.subr.bf16.mxu0 %v2466_v0  ;;  %1997 = vmatprep.subr.bf16.mxu1 %v2466_v0  ;;  %v59_v1 = vld [vmem:[%s2999_s1] sm:$0xf]  ;;  %v71_v5 = vld [vmem:[#allocation2 + $0x8] sm:$0xff]  ;;  %vm79_vm2 = vcmask 64512   ;;  %v2554_v7 = vld [vmem:[#allocation5 + $0x8] sm:$0xff]   ;;  %v2468_v8 = vmov 0  }
  0x29   :  { %1993 = vmatprep.mubr.msk.bf16.mxu0 %vm2467_vm0, %v2466_v0  ;;  %2001 = vmatprep.mubr.msk.bf16.mxu1 %vm2467_vm0, %v2466_v0  ;;  %v85_v2 = vsel %vm83_vm1, %v59_v1, 0  ;;  %v70_v4 = vld [vmem:[#allocation2] sm:$0xff]  ;;  %v2597_v45 = vld [vmem:[%s3002_s4 + $0x8] sm:$0xff]   ;;  %v2605_v47 = vld [vmem:[%s3002_s4 + $0x10] sm:$0xff]   ;;  %vm264_vm3 = vcmask 1041409   ;;  %vm163_vm4 = vcmask 261120  }
  0x2a   :  { %1992 = vmatpush3.bf16.msra.mxu0 %v85_v2  ;;  %v1921_v6 = vpack.c.bf16 %v71_v5, %v70_v4  ;;  %1998 = vmatpush3.bf16.msra.mxu1 %v2551_v3  ;;  %v1870_v12 = vld [vmem:[%s3001_s3] ss:$0 sm:$0xff]  ;;  %s2469_s3 = smov 32   ;;  %v2613_v48 = vld [vmem:[%s3002_s4 + $0x18] sm:$0xff]   ;;  %vm295_vm5 = vcmask 523264   ;;  %vm480_vm6 = vcmask 1042434  }
  0x2b   :  { %2005 = vmatprep.subr.bf16.mxu0 %v2466_v0  ;;  %1999 = vmatprep.subr.bf16.mxu1 %v2466_v0  ;;  %v2591_v44 = vld [vmem:[%s3002_s4] sm:$0xff]   ;;  %vm684_vm7 = vcmask 1043459   ;;  %vm884_vm8 = vcmask 1044484   ;;  %vm1090_vm9 = vcmask 1045509   ;;  %vm1290_vm10 = vcmask 1046534   ;;  %s2470_s12 = smov [#allocation7]  }
  0x2c   :  { %vm1496_vm11 = vcmask 1047559   ;;  %vm1850_vm12 = vcmask 156672  }
  0x2d   :  { %1994 = vmatmul.mubr.msk.bf16.vlgmr.msra.gmra.mrb[0].mxu0 %vm79_vm2, %v1921_v6 }
  0x2e   :  { %2013 = vmatprep.mubr.msk.bf16.mxu0 %vm2467_vm0, %v2466_v0  ;;  %2000 = vmatpush3.bf16.msra.mxu1 %v2554_v7 }
  0x2f   :  { %2017 = vmatprep.subr.bf16.mxu1 %v2466_v0  ;;  %2006 = vmatpush3.bf16.msra.mxu0 %v2591_v44 }
  0x30   :  { %2007 = vmatprep.subr.bf16.mxu0 %v2466_v0 }
  0x31   :  { %2002 = vmatmul.mubr.bf16.vlgmr.msra.gmra.mrb[0].mxu1 %v2468_v8 }
  0x32   :  { %2018 = vmatpush3.bf16.msra.mxu1 %v2551_v3  ;;  %2021 = vmatprep.mubr.msk.bf16.mxu1 %vm2467_vm0, %v2466_v0 }
  0x33   :  { %2019 = vmatprep.subr.bf16.mxu1 %v2466_v0  ;;  %2008 = vmatpush3.bf16.msra.mxu0 %v2597_v45 }
  0x34   :  { %2009 = vmatprep.subr.bf16.mxu0 %v2466_v0 }
  0x36   :  { %2020 = vmatpush3.bf16.msra.mxu1 %v2554_v7 }
  0x37   :  { %2025 = vmatprep.subr.bf16.mxu1 %v2466_v0  ;;  %2010 = vmatpush3.bf16.msra.mxu0 %v2605_v47 }
  0x38   :  { %2011 = vmatprep.subr.bf16.mxu0 %v2466_v0 }
  0x3b   :  { %2012 = vmatpush3.bf16.msra.mxu0 %v2613_v48 }
  0x3c   :  { %2037 = vmatprep.subr.bf16.mxu0 %v2466_v0 }
 0x100   :  { %v121_v9 = vpop.f32.mrb[0].mxu0 }
 0x101   :  { %v1995_v10 = vpop.f32.mrb[1].mxu0  ;;  %v2573_v18 = vadd.f32 %v1870_v12, %v121_v9 }
 0x102   :  { %v124_v11 = vpop.f32.mrb[2].mxu0 }
 0x103   :  { %v1996_v13 = vpop.f32.mrb[3].mxu0  ;;  %v2571_v15 = vadd.f32 %v1870_v12, %v124_v11 }
 0x104   :  { %v201_v14 = vpop.f32.mrb[0].mxu1 }
 0x105   :  { %v208_v16 = vrot.slane %v201_v14, 1  ;;  %v2003_v17 = vpop.f32.mrb[1].mxu1  ;;  %v211_v22 = vadd.f32 %v201_v14, %v2573_v18  ;;  %v2644_v14 = vld [vmem:[%s3003_s5] ss:$0 sm:$0xff] }
 0x106   :  { %v204_v19 = vpop.f32.mrb[2].mxu1 }
 0x107   :  { %v212_v20 = vadd.f32 %v208_v16, %v2571_v15  ;;  %v2004_v21 = vpop.f32.mrb[3].mxu1  ;;  %v1874_v26 = vmul.f32 -1.442695, %v211_v22 }
 0x109   :  { %2189 = vtanh.f32 %v212_v20  ;;  %v1875_v25 = vmul.f32 -1.442695, %v212_v20 }
 0x10a   :  { %2191 = vtanh.f32 %v211_v22 }
 0x10b   :  { %2193 = vpow2.f32 %v1875_v25 }
 0x10c   :  { %2195 = vpow2.f32 %v1874_v26 }
 0x113   :  { %v2190_v23 = vpop.eup %2189 }
 0x114   :  { %233 = vrot.lane.b32.xlu0 %v2190_v23, %s2464_s0  ;;  %v2192_v24 = vpop.eup %2191 }
 0x115   :  { %v2194_v27 = vpop.eup %2193 }
 0x116   :  { %v220_v28 = vadd.f32 1.0, %v2194_v27  ;;  %v2196_v29 = vpop.eup %2195 }
 0x117   :  { %v219_v30 = vadd.f32 1.0, %v2196_v29 }
 0x118   :  { %231 = vrot.lane.b32.xlu0 %v2192_v24, %s2464_s0  ;;  %2197 = vrcp.f32 %v220_v28 }
 0x119   :  { %2199 = vrcp.f32 %v219_v30 }
 0x122   :  { %v2198_v31 = vpop.eup %2197 }
 0x123   :  { %v2200_v34 = vpop.eup %2199  ;;  %v228_v37 = vmul.f32 0.0, %v2198_v31 }
 0x124   :  { %v227_v40 = vmul.f32 0.0, %v2200_v34 }
 0x186   :  { %v234_v32 = vpop.permute.xlu0 %233 }
 0x187   :  { %v238_v33 = vmul.f32 %v2198_v31, %v234_v32 }
 0x189   :  { %243 = vrot.lane.b32.xlu1 %v238_v33, %s2469_s3 }
 0x18a   :  { %v232_v35 = vpop.permute.xlu0 %231 }
 0x18b   :  { %v237_v36 = vmul.f32 %v2200_v34, %v232_v35 }
 0x18d   :  { %241 = vrot.lane.b32.xlu1 %v237_v36, %s2469_s3 }
 0x1fb   :  { %v244_v38 = vpop.permute.xlu1 %243 }
 0x1fc   :  { %v2581_v39 = vadd.f32 %v244_v38, %v228_v37 }
 0x1fe   :  { %2201 = vtanh.f32 %v2581_v39 }
 0x1ff   :  { %v242_v41 = vpop.permute.xlu1 %241 }
 0x200   :  { %v2584_v42 = vadd.f32 %v242_v41, %v227_v40 }
 0x202   :  { %2203 = vtanh.f32 %v2584_v42 }
 0x208   :  { %v2202_v43 = vpop.eup %2201 }
 0x209   :  { %255 = vrot.lane.b32.xlu0 %v2202_v43, %s2464_s0  ;;  %v440_v43 = vrot.slane %v2581_v39, 7 }
 0x20c   :  { %v2204_v46 = vpop.eup %2203 }
 0x20d   :  { %253 = vrot.lane.b32.xlu1 %v2204_v46, %s2464_s0 }
 0x27b   :  { %v256_v49 = vpop.permute.xlu0 %255 }
 0x27c   :  { %v260_v50 = vmul.f32 %v2198_v31, %v256_v49  ;;  %v439_v49 = vrot.slane %v2584_v42, 7 }
 0x27e   :  { %v364_v51 = vpack.c.bf16 %v260_v50, %v260_v50  ;;  %v263_v53 = vrot.slane %v260_v50, 7 }
 0x27f   :  { %v254_v52 = vpop.permute.xlu1 %253 }
 0x280   :  { %v368_v54 = vunpack.c.l.b16 %v364_v51  ;;  %v259_v55 = vmul.f32 %v2200_v34, %v254_v52 }
 0x282   :  { %v363_v56 = vpack.c.bf16 %v259_v55, %v259_v55  ;;  %v265_v57 = vsel %vm264_vm3, %v263_v53, %v259_v55  ;;  %v369_v58 = vrot.slane %v368_v54, 7 }
 0x283   :  { %266 = vrot.lane.b32.xlu1 %v265_v57, %s2469_s3 }
 0x284   :  { %v367_v59 = vunpack.c.l.b16 %v363_v56 }
 0x286   :  { %v370_v60 = vsel %vm264_vm3, %v369_v58, %v367_v59 }
 0x287   :  { %v371_v61 = vpack.c.b16 %v370_v60, %v370_v60 }
 0x289   :  { %372 = vrot.lane.b32.xlu0 %v371_v61, %s2469_s3 }
 0x2f5   :  { %v267_v62 = vpop.permute.xlu1 %266 }
 0x2f6   :  { %v269_v63 = vsel %vm163_vm4, %v267_v62, 0.0 }
 0x2f7   :  { %v270_v1 = vpack.c.bf16 %v269_v63, %v269_v63 }
 0x2f9   :  { %2014 = vmatmul.mubr.msk.bf16.vlgmr.msra.gmra.mrb[4].mxu0 %vm295_vm5, %v270_v1 }
 0x2fa   :  { %2038 = vmatpush3.bf16.msra.mxu0 %v2551_v3  ;;  %2041 = vmatprep.mubr.msk.bf16.mxu0 %vm2467_vm0, %v2466_v0 }
 0x2fb   :  { %v373_v2 = vpop.permute.xlu0 %372  ;;  %2039 = vmatprep.subr.bf16.mxu0 %v2466_v0 }
 0x2fc   :  { %2022 = vmatmul.mubr.msk.bf16.vlgmr.msra.gmra.mrb[4].mxu1 %vm163_vm4, %v373_v2 }
 0x2fd   :  { %2026 = vmatpush3.bf16.msra.mxu1 %v2591_v44  ;;  %2033 = vmatprep.mubr.msk.bf16.mxu1 %vm2467_vm0, %v2466_v0 }
 0x2fe   :  { %2040 = vmatpush3.bf16.msra.mxu0 %v2554_v7  ;;  %2027 = vmatprep.subr.bf16.mxu1 %v2466_v0 }
 0x2ff   :  { %2045 = vmatprep.subr.bf16.mxu0 %v2466_v0 }
 0x301   :  { %2028 = vmatpush3.bf16.msra.mxu1 %v2597_v45 }
 0x302   :  { %2029 = vmatprep.subr.bf16.mxu1 %v2466_v0 }
 0x305   :  { %2030 = vmatpush3.bf16.msra.mxu1 %v2605_v47 }
 0x306   :  { %2031 = vmatprep.subr.bf16.mxu1 %v2466_v0 }
 0x309   :  { %2032 = vmatpush3.bf16.msra.mxu1 %v2613_v48 }
 0x30a   :  { %2057 = vmatprep.subr.bf16.mxu1 %v2466_v0 }
 0x3cc   :  { %v333_v4 = vpop.f32.mrb[4].mxu0 }
 0x3cd   :  { %v2015_v5 = vpop.f32.mrb[5].mxu0  ;;  %v334_v19 = vadd.f32 %v2644_v14, %v333_v4 }
 0x3ce   :  { %v336_v6 = vpop.f32.mrb[6].mxu0 }
 0x3cf   :  { %v2016_v8 = vpop.f32.mrb[7].mxu0  ;;  %v411_v9 = vpop.f32.mrb[4].mxu1  ;;  %v1881_v25 = vmul.f32 -1.442695, %v334_v19 }
 0x3d0   :  { %v418_v10 = vrot.slane %v411_v9, 7  ;;  %v422_v11 = vadd.f32 %v411_v9, %v2571_v15  ;;  %v2023_v12 = vpop.f32.mrb[5].mxu1 }
 0x3d1   :  { %v414_v13 = vpop.f32.mrb[6].mxu1 }
 0x3d2   :  { %v421_v16 = vadd.f32 %v418_v10, %v2573_v18  ;;  %2205 = vtanh.f32 %v422_v11  ;;  %v2024_v17 = vpop.f32.mrb[7].mxu1  ;;  %v1884_v23 = vmul.f32 -1.442695, %v422_v11 }
 0x3d4   :  { %2207 = vtanh.f32 %v421_v16  ;;  %v1883_v24 = vmul.f32 -1.442695, %v421_v16 }
 0x3d5   :  { %2209 = vtanh.f32 %v334_v19 }
 0x3d6   :  { %2211 = vpow2.f32 %v1884_v23 }
 0x3d7   :  { %2213 = vpow2.f32 %v1883_v24 }
 0x3d8   :  { %2215 = vpow2.f32 %v1881_v25 }
 0x3dc   :  { %v2206_v20 = vpop.eup %2205 }
 0x3dd   :  { %449 = vrot.lane.b32.xlu1 %v2206_v20, %s2464_s0 }
 0x3de   :  { %v2208_v21 = vpop.eup %2207 }
 0x3df   :  { %447 = vrot.lane.b32.xlu0 %v2208_v21, %s2464_s0  ;;  %v2210_v22 = vpop.eup %2209 }
 0x3e0   :  { %v2212_v26 = vpop.eup %2211 }
 0x3e1   :  { %v2214_v27 = vpop.eup %2213  ;;  %v430_v28 = vadd.f32 1.0, %v2212_v26 }
 0x3e2   :  { %v429_v29 = vadd.f32 1.0, %v2214_v27  ;;  %v2216_v30 = vpop.eup %2215 }
 0x3e3   :  { %348 = vrot.lane.b32.xlu0 %v2210_v22, %s2464_s0  ;;  %2217 = vrcp.f32 %v430_v28  ;;  %v342_v31 = vadd.f32 1.0, %v2216_v30 }
 0x3e4   :  { %2219 = vrcp.f32 %v429_v29 }
 0x3e5   :  { %2221 = vrcp.f32 %v342_v31 }
 0x3ed   :  { %v2218_v32 = vpop.eup %2217 }
 0x3ee   :  { %v2220_v35 = vpop.eup %2219  ;;  %v444_v46 = vmul.f32 %v2218_v32, %v440_v43 }
 0x3ef   :  { %v2222_v38 = vpop.eup %2221  ;;  %v443_v52 = vmul.f32 %v2220_v35, %v439_v49 }
 0x3f0   :  { %v346_v55 = vmul.f32 0.0, %v2222_v38 }
 0x44f   :  { %v450_v33 = vpop.permute.xlu1 %449 }
 0x450   :  { %v454_v34 = vmul.f32 %v2218_v32, %v450_v33 }
 0x451   :  { %v448_v36 = vpop.permute.xlu0 %447 }
 0x452   :  { %459 = vrot.lane.b32.xlu0 %v454_v34, %s2469_s3  ;;  %v453_v37 = vmul.f32 %v2220_v35, %v448_v36 }
 0x454   :  { %457 = vrot.lane.b32.xlu1 %v453_v37, %s2469_s3 }
 0x455   :  { %v349_v40 = vpop.permute.xlu0 %348 }
 0x456   :  { %v351_v41 = vmul.f32 %v2222_v38, %v349_v40 }
 0x458   :  { %353 = vrot.lane.b32.xlu1 %v351_v41, %s2469_s3 }
 0x4c4   :  { %v460_v50 = vpop.permute.xlu0 %459 }
 0x4c5   :  { %v2656_v51 = vadd.f32 %v460_v50, %v444_v46 }
 0x4c6   :  { %v458_v53 = vpop.permute.xlu1 %457 }
 0x4c7   :  { %2223 = vtanh.f32 %v2656_v51  ;;  %v2659_v54 = vadd.f32 %v458_v53, %v443_v52 }
 0x4c9   :  { %2225 = vtanh.f32 %v2659_v54 }
 0x4ca   :  { %v354_v56 = vpop.permute.xlu1 %353 }
 0x4cb   :  { %v2662_v57 = vadd.f32 %v354_v56, %v346_v55 }
 0x4cd   :  { %2227 = vtanh.f32 %v2662_v57 }
 0x4d1   :  { %v2224_v39 = vpop.eup %2223 }
 0x4d2   :  { %471 = vrot.lane.b32.xlu1 %v2224_v39, %s2464_s0 }
 0x4d3   :  { %v2226_v42 = vpop.eup %2225 }
 0x4d4   :  { %469 = vrot.lane.b32.xlu0 %v2226_v42, %s2464_s0 }
 0x4d7   :  { %v2228_v58 = vpop.eup %2227 }
 0x4d8   :  { %359 = vrot.lane.b32.xlu0 %v2228_v58, %s2464_s0 }
 0x544   :  { %v472_v59 = vpop.permute.xlu1 %471 }
 0x545   :  { %v476_v60 = vmul.f32 %v2218_v32, %v472_v59 }
 0x546   :  { %v470_v62 = vpop.permute.xlu0 %469 }
 0x547   :  { %v479_v61 = vrot.slane %v476_v60, 7  ;;  %v475_v63 = vmul.f32 %v2220_v35, %v470_v62  ;;  %v567_v1 = vpack.c.bf16 %v476_v60, %v476_v60 }
 0x549   :  { %v566_v2 = vpack.c.bf16 %v475_v63, %v475_v63  ;;  %v481_v4 = vsel %vm480_vm6, %v479_v61, %v475_v63  ;;  %v571_v6 = vunpack.c.l.b16 %v567_v1 }
 0x54a   :  { %482 = vrot.lane.b32.xlu0 %v481_v4, %s2469_s3  ;;  %v360_v9 = vpop.permute.xlu0 %359 }
 0x54b   :  { %v570_v5 = vunpack.c.l.b16 %v566_v2  ;;  %v362_v11 = vmul.f32 %v2222_v38, %v360_v9 }
 0x54d   :  { %v572_v8 = vrot.slane %v570_v5, 1  ;;  %v486_v13 = vrot.slane %v362_v11, 7  ;;  %v643_v5 = vrot.slane %v2659_v54, 7 }
 0x54f   :  { %v573_v10 = vsel %vm264_vm3, %v571_v6, %v572_v8  ;;  %v644_v6 = vrot.slane %v2656_v51, 7 }
 0x550   :  { %v574_v12 = vpack.c.b16 %v573_v10, %v573_v10 }
 0x552   :  { %575 = vrot.lane.b32.xlu1 %v574_v12, %s2469_s3 }
 0x556   :  { %487 = vrot.lane.b32.xlu1 %v486_v13, %s2464_s0 }
 0x5bc   :  { %v483_v17 = vpop.permute.xlu0 %482 }
 0x5c4   :  { %v576_v16 = vpop.permute.xlu1 %575 }
 0x5c5   :  { %2042 = vmatmul.mubr.msk.bf16.vlgmr.msra.gmra.mrb[8].mxu0 %vm163_vm4, %v576_v16 }
 0x5c6   :  { %2046 = vmatpush3.bf16.msra.mxu0 %v2591_v44  ;;  %2053 = vmatprep.mubr.msk.bf16.mxu0 %vm2467_vm0, %v2466_v0 }
 0x5c7   :  { %2047 = vmatprep.subr.bf16.mxu0 %v2466_v0 }
 0x5c8   :  { %v488_v19 = vpop.permute.xlu1 %487 }
 0x5c9   :  { %v490_v20 = vsel %vm163_vm4, %v483_v17, %v488_v19 }
 0x5ca   :  { %v491_v21 = vpack.c.bf16 %v490_v20, %v490_v20  ;;  %2048 = vmatpush3.bf16.msra.mxu0 %v2597_v45 }
 0x5cb   :  { %2049 = vmatprep.subr.bf16.mxu0 %v2466_v0 }
 0x5cc   :  { %v495_v22 = vshll.u32 %v491_v21, 16  ;;  %v493_v23 = vshrl.u32 %v491_v21, 16 }
 0x5ce   :  { %v497_v24 = vrot.slane %v495_v22, 1  ;;  %2050 = vmatpush3.bf16.msra.mxu0 %v2605_v47 }
 0x5cf   :  { %2051 = vmatprep.subr.bf16.mxu0 %v2466_v0 }
 0x5d0   :  { %v498_v25 = vor.u32 %v497_v24, %v493_v23 }
 0x5d2   :  { %2034 = vmatmul.mubr.msk.bf16.vlgmr.msra.gmra.mrb[8].mxu1 %vm295_vm5, %v498_v25  ;;  %2052 = vmatpush3.bf16.msra.mxu0 %v2613_v48 }
 0x5d3   :  { %2058 = vmatpush3.bf16.msra.mxu1 %v2551_v3  ;;  %2061 = vmatprep.mubr.msk.bf16.mxu1 %vm2467_vm0, %v2466_v0 }
 0x5d4   :  { %2059 = vmatprep.subr.bf16.mxu1 %v2466_v0  ;;  %2077 = vmatprep.subr.bf16.mxu0 %v2466_v0 }
 0x5d7   :  { %2060 = vmatpush3.bf16.msra.mxu1 %v2554_v7 }
 0x5d8   :  { %2065 = vmatprep.subr.bf16.mxu1 %v2466_v0 }
 0x698   :  { %v614_v26 = vpop.f32.mrb[8].mxu0 }
 0x699   :  { %v621_v27 = vrot.slane %v614_v26, 6  ;;  %v622_v28 = vrot.slane %v614_v26, 7  ;;  %v2043_v29 = vpop.f32.mrb[9].mxu0 }
 0x69a   :  { %v617_v30 = vpop.f32.mrb[10].mxu0 }
 0x69b   :  { %v625_v31 = vadd.f32 %v621_v27, %v2573_v18  ;;  %v626_v32 = vadd.f32 %v622_v28, %v2571_v15  ;;  %v2044_v33 = vpop.f32.mrb[11].mxu0 }
 0x69d   :  { %2229 = vtanh.f32 %v625_v31  ;;  %v1888_v46 = vmul.f32 -1.442695, %v625_v31  ;;  %v1889_v49 = vmul.f32 -1.442695, %v626_v32 }
 0x69e   :  { %2231 = vtanh.f32 %v626_v32 }
 0x6a5   :  { %v536_v34 = vpop.f32.mrb[8].mxu1 }
 0x6a6   :  { %v537_v35 = vadd.f32 %v2644_v14, %v536_v34  ;;  %v2035_v36 = vpop.f32.mrb[9].mxu1 }
 0x6a7   :  { %v2230_v37 = vpop.eup %2229  ;;  %v539_v38 = vpop.f32.mrb[10].mxu1 }
 0x6a8   :  { %v2232_v40 = vpop.eup %2231  ;;  %2233 = vtanh.f32 %v537_v35  ;;  %v2036_v41 = vpop.f32.mrb[11].mxu1  ;;  %651 = vrot.lane.b32.xlu0 %v2230_v37, %s2464_s0  ;;  %v1886_v50 = vmul.f32 -1.442695, %v537_v35 }
 0x6a9   :  { %653 = vrot.lane.b32.xlu1 %v2232_v40, %s2464_s0  ;;  %2235 = vpow2.f32 %v1888_v46 }
 0x6aa   :  { %2237 = vpow2.f32 %v1889_v49 }
 0x6ab   :  { %2239 = vpow2.f32 %v1886_v50 }
 0x6b2   :  { %v2234_v43 = vpop.eup %2233 }
 0x6b3   :  { %551 = vrot.lane.b32.xlu0 %v2234_v43, %s2464_s0  ;;  %v2236_v52 = vpop.eup %2235 }
 0x6b4   :  { %v2238_v53 = vpop.eup %2237  ;;  %v633_v55 = vadd.f32 1.0, %v2236_v52 }
 0x6b5   :  { %v634_v56 = vadd.f32 1.0, %v2238_v53  ;;  %v2240_v39 = vpop.eup %2239 }
 0x6b6   :  { %2241 = vrcp.f32 %v633_v55  ;;  %v545_v42 = vadd.f32 1.0, %v2240_v39 }
 0x6b7   :  { %2243 = vrcp.f32 %v634_v56 }
 0x6b8   :  { %2245 = vrcp.f32 %v545_v42 }
 0x6c0   :  { %v2242_v58 = vpop.eup %2241 }
 0x6c1   :  { %v2244_v60 = vpop.eup %2243  ;;  %v647_v8 = vmul.f32 %v2242_v58, %v643_v5 }
 0x6c2   :  { %v2246_v1 = vpop.eup %2245  ;;  %v648_v9 = vmul.f32 %v2244_v60, %v644_v6 }
 0x6c3   :  { %v549_v16 = vmul.f32 %v2246_v1, %v2662_v57 }
 0x71a   :  { %v652_v59 = vpop.permute.xlu0 %651 }
 0x71b   :  { %v654_v61 = vpop.permute.xlu1 %653  ;;  %v657_v62 = vmul.f32 %v2242_v58, %v652_v59 }
 0x71c   :  { %v658_v63 = vmul.f32 %v2244_v60, %v654_v61 }
 0x71d   :  { %661 = vrot.lane.b32.xlu1 %v657_v62, %s2469_s3 }
 0x71e   :  { %663 = vrot.lane.b32.xlu0 %v658_v63, %s2469_s3 }
 0x725   :  { %v552_v2 = vpop.permute.xlu0 %551 }
 0x726   :  { %v554_v4 = vmul.f32 %v2246_v1, %v552_v2 }
 0x728   :  { %556 = vrot.lane.b32.xlu1 %v554_v4, %s2469_s3 }
 0x78f   :  { %v662_v10 = vpop.permute.xlu1 %661 }
 0x790   :  { %v664_v11 = vpop.permute.xlu0 %663  ;;  %v2702_v12 = vadd.f32 %v662_v10, %v647_v8 }
 0x791   :  { %v2704_v13 = vadd.f32 %v664_v11, %v648_v9 }
 0x792   :  { %2247 = vtanh.f32 %v2702_v12 }
 0x793   :  { %2249 = vtanh.f32 %v2704_v13 }
 0x79a   :  { %v557_v17 = vpop.permute.xlu1 %556 }
 0x79b   :  { %v2709_v19 = vadd.f32 %v557_v17, %v549_v16 }
 0x79c   :  { %v2248_v54 = vpop.eup %2247 }
 0x79d   :  { %v2250_v20 = vpop.eup %2249  ;;  %2251 = vtanh.f32 %v2709_v19  ;;  %673 = vrot.lane.b32.xlu0 %v2248_v54, %s2464_s0 }
 0x79e   :  { %675 = vrot.lane.b32.xlu1 %v2250_v20, %s2464_s0 }
 0x7a7   :  { %v2252_v51 = vpop.eup %2251 }
 0x7a8   :  { %562 = vrot.lane.b32.xlu0 %v2252_v51, %s2464_s0 }
 0x80f   :  { %v674_v21 = vpop.permute.xlu0 %673 }
 0x810   :  { %v676_v22 = vpop.permute.xlu1 %675  ;;  %v679_v23 = vmul.f32 %v2242_v58, %v674_v21 }
 0x811   :  { %v680_v24 = vmul.f32 %v2244_v60, %v676_v22 }
 0x812   :  { %v765_v25 = vpack.c.bf16 %v679_v23, %v679_v23 }
 0x813   :  { %v683_v57 = vrot.slane %v680_v24, 7  ;;  %v766_v26 = vpack.c.bf16 %v680_v24, %v680_v24 }
 0x814   :  { %v769_v27 = vunpack.c.l.b16 %v765_v25 }
 0x815   :  { %v770_v28 = vunpack.c.l.b16 %v766_v26  ;;  %v685_v29 = vsel %vm684_vm7, %v683_v57, %v679_v23  ;;  %v843_v26 = vrot.slane %v2702_v12, 7 }
 0x816   :  { %v771_v30 = vrot.slane %v769_v27, 2  ;;  %686 = vrot.lane.b32.xlu0 %v685_v29, %s2469_s3  ;;  %v844_v27 = vrot.slane %v2704_v13, 7 }
 0x817   :  { %v772_v31 = vrot.slane %v770_v28, 1 }
 0x819   :  { %v773_v32 = vsel %vm264_vm3, %v772_v31, %v771_v30 }
 0x81a   :  { %v563_v33 = vpop.permute.xlu0 %562  ;;  %v774_v34 = vpack.c.b16 %v773_v32, %v773_v32 }
 0x81b   :  { %v565_v35 = vmul.f32 %v2246_v1, %v563_v33 }
 0x81c   :  { %775 = vrot.lane.b32.xlu1 %v774_v34, %s2469_s3 }
 0x81d   :  { %v690_v36 = vrot.slane %v565_v35, 6 }
 0x820   :  { %691 = vrot.lane.b32.xlu1 %v690_v36, %s2464_s0 }
 0x888   :  { %v687_v38 = vpop.permute.xlu0 %686 }
 0x88e   :  { %v776_v37 = vpop.permute.xlu1 %775 }
 0x88f   :  { %2062 = vmatmul.mubr.msk.bf16.vlgmr.msra.gmra.mrb[12].mxu1 %vm163_vm4, %v776_v37 }
 0x890   :  { %2066 = vmatpush3.bf16.msra.mxu1 %v2591_v44  ;;  %2073 = vmatprep.mubr.msk.bf16.mxu1 %vm2467_vm0, %v2466_v0 }
 0x891   :  { %2067 = vmatprep.subr.bf16.mxu1 %v2466_v0 }
 0x892   :  { %v692_v40 = vpop.permute.xlu1 %691 }
 0x893   :  { %v694_v41 = vsel %vm163_vm4, %v687_v38, %v692_v40 }
 0x894   :  { %v695_v43 = vpack.c.bf16 %v694_v41, %v694_v41  ;;  %2068 = vmatpush3.bf16.msra.mxu1 %v2597_v45 }
 0x895   :  { %2069 = vmatprep.subr.bf16.mxu1 %v2466_v0 }
 0x896   :  { %v697_v46 = vrot.slane %v695_v43, 1 }
 0x898   :  { %2054 = vmatmul.mubr.msk.bf16.vlgmr.msra.gmra.mrb[12].mxu0 %vm295_vm5, %v697_v46  ;;  %2070 = vmatpush3.bf16.msra.mxu1 %v2605_v47 }
 0x899   :  { %2078 = vmatpush3.bf16.msra.mxu0 %v2551_v3  ;;  %2081 = vmatprep.mubr.msk.bf16.mxu0 %vm2467_vm0, %v2466_v0 }
 0x89a   :  { %2079 = vmatprep.subr.bf16.mxu0 %v2466_v0  ;;  %2071 = vmatprep.subr.bf16.mxu1 %v2466_v0 }
 0x89c   :  { %2072 = vmatpush3.bf16.msra.mxu1 %v2613_v48 }
 0x89d   :  { %2080 = vmatpush3.bf16.msra.mxu0 %v2554_v7  ;;  %2097 = vmatprep.subr.bf16.mxu1 %v2466_v0 }
 0x89e   :  { %2085 = vmatprep.subr.bf16.mxu0 %v2466_v0 }
 0x962   :  { %v814_v49 = vpop.f32.mrb[12].mxu1 }
 0x963   :  { %v821_v50 = vrot.slane %v814_v49, 5  ;;  %v822_v52 = vrot.slane %v814_v49, 6  ;;  %v2063_v53 = vpop.f32.mrb[13].mxu1 }
 0x964   :  { %v817_v55 = vpop.f32.mrb[14].mxu1 }
 0x965   :  { %v825_v56 = vadd.f32 %v821_v50, %v2573_v18  ;;  %v826_v39 = vadd.f32 %v822_v52, %v2571_v15  ;;  %v2064_v42 = vpop.f32.mrb[15].mxu1 }
 0x967   :  { %2253 = vtanh.f32 %v825_v56  ;;  %v1893_v4 = vmul.f32 -1.442695, %v825_v56  ;;  %v1894_v5 = vmul.f32 -1.442695, %v826_v39 }
 0x968   :  { %2255 = vtanh.f32 %v826_v39 }
 0x96b   :  { %v735_v58 = vpop.f32.mrb[12].mxu0 }
 0x96c   :  { %v736_v59 = vadd.f32 %v2644_v14, %v735_v58  ;;  %v2055_v60 = vpop.f32.mrb[13].mxu0 }
 0x96d   :  { %v738_v61 = vpop.f32.mrb[14].mxu0 }
 0x96e   :  { %2257 = vtanh.f32 %v736_v59  ;;  %v2056_v62 = vpop.f32.mrb[15].mxu0  ;;  %v1891_v6 = vmul.f32 -1.442695, %v736_v59 }
 0x96f   :  { %2259 = vpow2.f32 %v1893_v4 }
 0x970   :  { %2261 = vpow2.f32 %v1894_v5 }
 0x971   :  { %v2254_v63 = vpop.eup %2253  ;;  %2263 = vpow2.f32 %v1891_v6 }
 0x972   :  { %v2256_v1 = vpop.eup %2255  ;;  %851 = vrot.lane.b32.xlu0 %v2254_v63, %s2464_s0 }
 0x973   :  { %853 = vrot.lane.b32.xlu1 %v2256_v1, %s2464_s0 }
 0x978   :  { %v2258_v2 = vpop.eup %2257 }
 0x979   :  { %750 = vrot.lane.b32.xlu0 %v2258_v2, %s2464_s0  ;;  %v2260_v8 = vpop.eup %2259 }
 0x97a   :  { %v2262_v9 = vpop.eup %2261  ;;  %v833_v10 = vadd.f32 1.0, %v2260_v8 }
 0x97b   :  { %v834_v11 = vadd.f32 1.0, %v2262_v9  ;;  %v2264_v16 = vpop.eup %2263 }
 0x97c   :  { %2265 = vrcp.f32 %v833_v10  ;;  %v744_v17 = vadd.f32 1.0, %v2264_v16 }
 0x97d   :  { %2267 = vrcp.f32 %v834_v11 }
 0x97e   :  { %2269 = vrcp.f32 %v744_v17 }
 0x986   :  { %v2266_v54 = vpop.eup %2265 }
 0x987   :  { %v2268_v51 = vpop.eup %2267  ;;  %v847_v28 = vmul.f32 %v2266_v54, %v843_v26 }
 0x988   :  { %v2270_v24 = vpop.eup %2269  ;;  %v848_v30 = vmul.f32 %v2268_v51, %v844_v27 }
 0x989   :  { %v748_v34 = vmul.f32 %v2270_v24, %v2709_v19 }
 0x9e4   :  { %v852_v20 = vpop.permute.xlu0 %851 }
 0x9e5   :  { %v854_v21 = vpop.permute.xlu1 %853  ;;  %v857_v22 = vmul.f32 %v2266_v54, %v852_v20 }
 0x9e6   :  { %v858_v23 = vmul.f32 %v2268_v51, %v854_v21 }
 0x9e7   :  { %861 = vrot.lane.b32.xlu1 %v857_v22, %s2469_s3 }
 0x9e8   :  { %863 = vrot.lane.b32.xlu0 %v858_v23, %s2469_s3 }
 0x9eb   :  { %v751_v25 = vpop.permute.xlu0 %750 }
 0x9ec   :  { %v753_v57 = vmul.f32 %v2270_v24, %v751_v25 }
 0x9ee   :  { %755 = vrot.lane.b32.xlu1 %v753_v57, %s2469_s3 }
 0xa59   :  { %v862_v29 = vpop.permute.xlu1 %861 }
 0xa5a   :  { %v2749_v31 = vadd.f32 %v862_v29, %v847_v28  ;;  %v864_v32 = vpop.permute.xlu0 %863 }
 0xa5b   :  { %v2751_v33 = vadd.f32 %v864_v32, %v848_v30 }
 0xa5c   :  { %2271 = vtanh.f32 %v2749_v31 }
 0xa5d   :  { %2273 = vtanh.f32 %v2751_v33 }
 0xa60   :  { %v756_v35 = vpop.permute.xlu1 %755 }
 0xa61   :  { %v2756_v36 = vadd.f32 %v756_v35, %v748_v34 }
 0xa63   :  { %2275 = vtanh.f32 %v2756_v36 }
 0xa66   :  { %v2272_v12 = vpop.eup %2271 }
 0xa67   :  { %v2274_v13 = vpop.eup %2273  ;;  %873 = vrot.lane.b32.xlu0 %v2272_v12, %s2464_s0 }
 0xa68   :  { %875 = vrot.lane.b32.xlu1 %v2274_v13, %s2464_s0 }
 0xa6d   :  { %v2276_v37 = vpop.eup %2275 }
 0xa6e   :  { %761 = vrot.lane.b32.xlu0 %v2276_v37, %s2464_s0 }
 0xad9   :  { %v874_v38 = vpop.permute.xlu0 %873 }
 0xada   :  { %v879_v40 = vmul.f32 %v2266_v54, %v874_v38  ;;  %v876_v41 = vpop.permute.xlu1 %875 }
 0xadb   :  { %v880_v43 = vmul.f32 %v2268_v51, %v876_v41 }
 0xadc   :  { %v971_v46 = vpack.c.bf16 %v879_v40, %v879_v40 }
 0xadd   :  { %v883_v19 = vrot.slane %v880_v43, 7  ;;  %v972_v49 = vpack.c.bf16 %v880_v43, %v880_v43 }
 0xade   :  { %v975_v50 = vunpack.c.l.b16 %v971_v46 }
 0xadf   :  { %v976_v52 = vunpack.c.l.b16 %v972_v49  ;;  %v885_v53 = vsel %vm884_vm8, %v883_v19, %v879_v40 }
 0xae0   :  { %v977_v55 = vrot.slane %v975_v50, 3  ;;  %886 = vrot.lane.b32.xlu0 %v885_v53, %s2469_s3  ;;  %v762_v39 = vpop.permute.xlu0 %761  ;;  %v1050_v53 = vrot.slane %v2751_v33, 7 }
 0xae1   :  { %v978_v56 = vrot.slane %v976_v52, 2  ;;  %v764_v58 = vmul.f32 %v2270_v24, %v762_v39  ;;  %v1049_v52 = vrot.slane %v2749_v31, 7 }
 0xae3   :  { %v979_v42 = vsel %vm264_vm3, %v978_v56, %v977_v55  ;;  %v890_v60 = vrot.slane %v764_v58, 5 }
 0xae4   :  { %v980_v59 = vpack.c.b16 %v979_v42, %v979_v42 }
 0xae6   :  { %981 = vrot.lane.b32.xlu1 %v980_v59, %s2469_s3 }
 0xaea   :  { %891 = vrot.lane.b32.xlu1 %v890_v60, %s2464_s0 }
 0xb52   :  { %v887_v62 = vpop.permute.xlu0 %886 }
 0xb58   :  { %v982_v61 = vpop.permute.xlu1 %981 }
 0xb59   :  { %2082 = vmatmul.mubr.msk.bf16.vlgmr.msra.gmra.mrb[16].mxu0 %vm163_vm4, %v982_v61 }
 0xb5a   :  { %2086 = vmatpush3.bf16.msra.mxu0 %v2591_v44  ;;  %2093 = vmatprep.mubr.msk.bf16.mxu0 %vm2467_vm0, %v2466_v0 }
 0xb5b   :  { %2087 = vmatprep.subr.bf16.mxu0 %v2466_v0 }
 0xb5c   :  { %v892_v63 = vpop.permute.xlu1 %891 }
 0xb5d   :  { %v894_v1 = vsel %vm163_vm4, %v887_v62, %v892_v63 }
 0xb5e   :  { %v895_v2 = vpack.c.bf16 %v894_v1, %v894_v1  ;;  %2088 = vmatpush3.bf16.msra.mxu0 %v2597_v45 }
 0xb5f   :  { %2089 = vmatprep.subr.bf16.mxu0 %v2466_v0 }
 0xb60   :  { %v897_v4 = vshrl.u32 %v895_v2, 16  ;;  %v900_v5 = vshll.u32 %v895_v2, 16 }
 0xb62   :  { %v899_v6 = vrot.slane %v897_v4, 1  ;;  %v902_v8 = vrot.slane %v900_v5, 2  ;;  %2090 = vmatpush3.bf16.msra.mxu0 %v2605_v47 }
 0xb63   :  { %2091 = vmatprep.subr.bf16.mxu0 %v2466_v0 }
 0xb64   :  { %v903_v9 = vor.u32 %v902_v8, %v899_v6 }
 0xb66   :  { %2074 = vmatmul.mubr.msk.bf16.vlgmr.msra.gmra.mrb[16].mxu1 %vm295_vm5, %v903_v9  ;;  %2092 = vmatpush3.bf16.msra.mxu0 %v2613_v48 }
 0xb67   :  { %2098 = vmatpush3.bf16.msra.mxu1 %v2551_v3  ;;  %2101 = vmatprep.mubr.msk.bf16.mxu1 %vm2467_vm0, %v2466_v0 }
 0xb68   :  { %2099 = vmatprep.subr.bf16.mxu1 %v2466_v0  ;;  %2117 = vmatprep.subr.bf16.mxu0 %v2466_v0 }
 0xb6b   :  { %2100 = vmatpush3.bf16.msra.mxu1 %v2554_v7 }
 0xb6c   :  { %2105 = vmatprep.subr.bf16.mxu1 %v2466_v0 }
 0xc2c   :  { %v1020_v10 = vpop.f32.mrb[16].mxu0 }
 0xc2d   :  { %v1027_v11 = vrot.slane %v1020_v10, 4  ;;  %v1028_v16 = vrot.slane %v1020_v10, 5  ;;  %v2083_v17 = vpop.f32.mrb[17].mxu0 }
 0xc2e   :  { %v1023_v54 = vpop.f32.mrb[18].mxu0 }
 0xc2f   :  { %v1031_v20 = vadd.f32 %v1027_v11, %v2573_v18  ;;  %v1032_v3 = vadd.f32 %v1028_v16, %v2571_v15  ;;  %v2084_v51 = vpop.f32.mrb[19].mxu0 }
 0xc31   :  { %2277 = vtanh.f32 %v1031_v20  ;;  %v1898_v27 = vmul.f32 -1.442695, %v1031_v20  ;;  %v1899_v28 = vmul.f32 -1.442695, %v1032_v3 }
 0xc32   :  { %2279 = vtanh.f32 %v1032_v3 }
 0xc39   :  { %v941_v21 = vpop.f32.mrb[16].mxu1 }
 0xc3a   :  { %v942_v22 = vadd.f32 %v2644_v14, %v941_v21  ;;  %v2075_v23 = vpop.f32.mrb[17].mxu1 }
 0xc3b   :  { %v2278_v24 = vpop.eup %2277  ;;  %v944_v7 = vpop.f32.mrb[18].mxu1 }
 0xc3c   :  { %v2280_v25 = vpop.eup %2279  ;;  %2281 = vtanh.f32 %v942_v22  ;;  %v2076_v57 = vpop.f32.mrb[19].mxu1  ;;  %1057 = vrot.lane.b32.xlu0 %v2278_v24, %s2464_s0  ;;  %v1896_v29 = vmul.f32 -1.442695, %v942_v22 }
 0xc3d   :  { %1059 = vrot.lane.b32.xlu1 %v2280_v25, %s2464_s0  ;;  %2283 = vpow2.f32 %v1898_v27 }
 0xc3e   :  { %2285 = vpow2.f32 %v1899_v28 }
 0xc3f   :  { %2287 = vpow2.f32 %v1896_v29 }
 0xc46   :  { %v2282_v26 = vpop.eup %2281 }
 0xc47   :  { %956 = vrot.lane.b32.xlu0 %v2282_v26, %s2464_s0  ;;  %v2284_v30 = vpop.eup %2283 }
 0xc48   :  { %v2286_v32 = vpop.eup %2285  ;;  %v1039_v34 = vadd.f32 1.0, %v2284_v30 }
 0xc49   :  { %v1040_v35 = vadd.f32 1.0, %v2286_v32  ;;  %v2288_v12 = vpop.eup %2287 }
 0xc4a   :  { %2289 = vrcp.f32 %v1039_v34  ;;  %v950_v13 = vadd.f32 1.0, %v2288_v12 }
 0xc4b   :  { %2291 = vrcp.f32 %v1040_v35 }
 0xc4c   :  { %2293 = vrcp.f32 %v950_v13 }
 0xc54   :  { %v2290_v37 = vpop.eup %2289 }
 0xc55   :  { %v2292_v40 = vpop.eup %2291  ;;  %v1053_v55 = vmul.f32 %v2290_v37, %v1049_v52 }
 0xc56   :  { %v2294_v19 = vpop.eup %2293  ;;  %v1054_v56 = vmul.f32 %v2292_v40, %v1050_v53 }
 0xc57   :  { %v954_v60 = vmul.f32 %v2294_v19, %v2756_v36 }
 0xcae   :  { %v1058_v38 = vpop.permute.xlu0 %1057 }
 0xcaf   :  { %v1060_v41 = vpop.permute.xlu1 %1059  ;;  %v1063_v43 = vmul.f32 %v2290_v37, %v1058_v38 }
 0xcb0   :  { %v1064_v46 = vmul.f32 %v2292_v40, %v1060_v41 }
 0xcb1   :  { %1067 = vrot.lane.b32.xlu1 %v1063_v43, %s2469_s3 }
 0xcb2   :  { %1069 = vrot.lane.b32.xlu0 %v1064_v46, %s2469_s3 }
 0xcb9   :  { %v957_v49 = vpop.permute.xlu0 %956 }
 0xcba   :  { %v959_v50 = vmul.f32 %v2294_v19, %v957_v49 }
 0xcbc   :  { %961 = vrot.lane.b32.xlu1 %v959_v50, %s2469_s3 }
 0xd23   :  { %v1068_v39 = vpop.permute.xlu1 %1067 }
 0xd24   :  { %v1070_v42 = vpop.permute.xlu0 %1069  ;;  %v2796_v58 = vadd.f32 %v1068_v39, %v1053_v55 }
 0xd25   :  { %v2798_v59 = vadd.f32 %v1070_v42, %v1054_v56 }
 0xd26   :  { %2295 = vtanh.f32 %v2796_v58 }
 0xd27   :  { %2297 = vtanh.f32 %v2798_v59 }
 0xd2e   :  { %v962_v61 = vpop.permute.xlu1 %961 }
 0xd2f   :  { %v2803_v62 = vadd.f32 %v962_v61, %v954_v60 }
 0xd30   :  { %v2296_v31 = vpop.eup %2295 }
 0xd31   :  { %v2298_v63 = vpop.eup %2297  ;;  %2299 = vtanh.f32 %v2803_v62  ;;  %1079 = vrot.lane.b32.xlu0 %v2296_v31, %s2464_s0 }
 0xd32   :  { %1081 = vrot.lane.b32.xlu1 %v2298_v63, %s2464_s0 }
 0xd3b   :  { %v2300_v33 = vpop.eup %2299 }
 0xd3c   :  { %967 = vrot.lane.b32.xlu0 %v2300_v33, %s2464_s0 }
 0xda3   :  { %v1080_v1 = vpop.permute.xlu0 %1079 }
 0xda4   :  { %v1082_v2 = vpop.permute.xlu1 %1081  ;;  %v1085_v4 = vmul.f32 %v2290_v37, %v1080_v1 }
 0xda5   :  { %v1086_v5 = vmul.f32 %v2292_v40, %v1082_v2  ;;  %v1249_v2 = vrot.slane %v2796_v58, 7 }
 0xda6   :  { %v1171_v6 = vpack.c.bf16 %v1085_v4, %v1085_v4 }
 0xda7   :  { %v1089_v36 = vrot.slane %v1086_v5, 7  ;;  %v1172_v8 = vpack.c.bf16 %v1086_v5, %v1086_v5 }
 0xda8   :  { %v1175_v9 = vunpack.c.l.b16 %v1171_v6 }
 0xda9   :  { %v1176_v10 = vunpack.c.l.b16 %v1172_v8  ;;  %v1091_v11 = vsel %vm1090_vm9, %v1089_v36, %v1085_v4  ;;  %v1250_v4 = vrot.slane %v2798_v59, 7 }
 0xdaa   :  { %v1177_v16 = vrot.slane %v1175_v9, 4  ;;  %1092 = vrot.lane.b32.xlu0 %v1091_v11, %s2469_s3 }
 0xdab   :  { %v1178_v17 = vrot.slane %v1176_v10, 3 }
 0xdad   :  { %v1179_v54 = vsel %vm264_vm3, %v1178_v17, %v1177_v16 }
 0xdae   :  { %v968_v20 = vpop.permute.xlu0 %967  ;;  %v1180_v3 = vpack.c.b16 %v1179_v54, %v1179_v54 }
 0xdaf   :  { %v970_v51 = vmul.f32 %v2294_v19, %v968_v20 }
 0xdb0   :  { %1181 = vrot.lane.b32.xlu1 %v1180_v3, %s2469_s3 }
 0xdb1   :  { %v1096_v21 = vrot.slane %v970_v51, 4 }
 0xdb4   :  { %1097 = vrot.lane.b32.xlu1 %v1096_v21, %s2464_s0 }
 0xe1c   :  { %v1093_v23 = vpop.permute.xlu0 %1092 }
 0xe22   :  { %v1182_v22 = vpop.permute.xlu1 %1181 }
 0xe23   :  { %2102 = vmatmul.mubr.msk.bf16.vlgmr.msra.gmra.mrb[20].mxu1 %vm163_vm4, %v1182_v22 }
 0xe24   :  { %2106 = vmatpush3.bf16.msra.mxu1 %v2591_v44  ;;  %2113 = vmatprep.mubr.msk.bf16.mxu1 %vm2467_vm0, %v2466_v0  ;;  %v2823_v44 = vld [vmem:[#allocation5] sm:$0xff]  }
 0xe25   :  { %2107 = vmatprep.subr.bf16.mxu1 %v2466_v0 }
 0xe26   :  { %v1098_v24 = vpop.permute.xlu1 %1097 }
 0xe27   :  { %v1100_v7 = vsel %vm163_vm4, %v1093_v23, %v1098_v24 }
 0xe28   :  { %v1101_v25 = vpack.c.bf16 %v1100_v7, %v1100_v7  ;;  %2108 = vmatpush3.bf16.msra.mxu1 %v2597_v45  ;;  %v2831_v45 = vld [vmem:[#allocation5 + $0x8] sm:$0xff]  }
 0xe29   :  { %2109 = vmatprep.subr.bf16.mxu1 %v2466_v0 }
 0xe2a   :  { %v1103_v57 = vrot.slane %v1101_v25, 2 }
 0xe2c   :  { %2094 = vmatmul.mubr.msk.bf16.vlgmr.msra.gmra.mrb[20].mxu0 %vm295_vm5, %v1103_v57  ;;  %2110 = vmatpush3.bf16.msra.mxu1 %v2605_v47 }
 0xe2d   :  { %2118 = vmatpush3.bf16.msra.mxu0 %v2823_v44  ;;  %2121 = vmatprep.mubr.msk.bf16.mxu0 %vm2467_vm0, %v2466_v0 }
 0xe2e   :  { %2119 = vmatprep.subr.bf16.mxu0 %v2466_v0  ;;  %2111 = vmatprep.subr.bf16.mxu1 %v2466_v0 }
 0xe30   :  { %2112 = vmatpush3.bf16.msra.mxu1 %v2613_v48 }
 0xe31   :  { %2120 = vmatpush3.bf16.msra.mxu0 %v2831_v45  ;;  %2137 = vmatprep.subr.bf16.mxu1 %v2466_v0 }
 0xe32   :  { %2125 = vmatprep.subr.bf16.mxu0 %v2466_v0 }
 0xef6   :  { %v1220_v47 = vpop.f32.mrb[20].mxu1 }
 0xef7   :  { %v1227_v26 = vrot.slane %v1220_v47, 3  ;;  %v1228_v27 = vrot.slane %v1220_v47, 4  ;;  %v2103_v28 = vpop.f32.mrb[21].mxu1 }
 0xef8   :  { %v1223_v29 = vpop.f32.mrb[22].mxu1 }
 0xef9   :  { %v1231_v30 = vadd.f32 %v1227_v26, %v2573_v18  ;;  %v1232_v32 = vadd.f32 %v1228_v27, %v2571_v15  ;;  %v2104_v34 = vpop.f32.mrb[23].mxu1 }
 0xefb   :  { %2301 = vtanh.f32 %v1231_v30  ;;  %v1903_v43 = vmul.f32 -1.442695, %v1231_v30  ;;  %v1904_v46 = vmul.f32 -1.442695, %v1232_v32 }
 0xefc   :  { %2303 = vtanh.f32 %v1232_v32 }
 0xeff   :  { %v1141_v48 = vpop.f32.mrb[20].mxu0 }
 0xf00   :  { %v1142_v35 = vadd.f32 %v2644_v14, %v1141_v48  ;;  %v2095_v12 = vpop.f32.mrb[21].mxu0 }
 0xf01   :  { %v1144_v13 = vpop.f32.mrb[22].mxu0 }
 0xf02   :  { %2305 = vtanh.f32 %v1142_v35  ;;  %v2096_v37 = vpop.f32.mrb[23].mxu0  ;;  %v1901_v19 = vmul.f32 -1.442695, %v1142_v35  ;;  %v2869_v13 = vld [vmem:[%s3002_s4] sm:$0xff]  }
 0xf03   :  { %2307 = vpow2.f32 %v1903_v43  ;;  %v2878_v43 = vld [vmem:[%s3002_s4 + $0x8] sm:$0xff]  }
 0xf04   :  { %2309 = vpow2.f32 %v1904_v46 }
 0xf05   :  { %v2302_v38 = vpop.eup %2301  ;;  %2311 = vpow2.f32 %v1901_v19  ;;  %v2887_v19 = vld [vmem:[%s3002_s4 + $0x10] sm:$0xff]  }
 0xf06   :  { %v2304_v40 = vpop.eup %2303  ;;  %1257 = vrot.lane.b32.xlu0 %v2302_v38, %s2464_s0 }
 0xf07   :  { %1259 = vrot.lane.b32.xlu1 %v2304_v40, %s2464_s0 }
 0xf0c   :  { %v2306_v41 = vpop.eup %2305 }
 0xf0d   :  { %1156 = vrot.lane.b32.xlu0 %v2306_v41, %s2464_s0  ;;  %v2308_v14 = vpop.eup %2307 }
 0xf0e   :  { %v2310_v49 = vpop.eup %2309  ;;  %v1239_v50 = vadd.f32 1.0, %v2308_v14 }
 0xf0f   :  { %v1240_v52 = vadd.f32 1.0, %v2310_v49  ;;  %v2312_v53 = vpop.eup %2311 }
 0xf10   :  { %2313 = vrcp.f32 %v1239_v50  ;;  %v1150_v55 = vadd.f32 1.0, %v2312_v53 }
 0xf11   :  { %2315 = vrcp.f32 %v1240_v52 }
 0xf12   :  { %2317 = vrcp.f32 %v1150_v55 }
 0xf1a   :  { %v2314_v56 = vpop.eup %2313 }
 0xf1b   :  { %v2316_v42 = vpop.eup %2315  ;;  %v1253_v5 = vmul.f32 %v2314_v56, %v1249_v2 }
 0xf1c   :  { %v2318_v63 = vpop.eup %2317  ;;  %v1254_v36 = vmul.f32 %v2316_v42, %v1250_v4 }
 0xf1d   :  { %v1154_v11 = vmul.f32 %v2318_v63, %v2803_v62 }
 0xf78   :  { %v1258_v39 = vpop.permute.xlu0 %1257 }
 0xf79   :  { %v1260_v60 = vpop.permute.xlu1 %1259  ;;  %v1263_v61 = vmul.f32 %v2314_v56, %v1258_v39 }
 0xf7a   :  { %v1264_v31 = vmul.f32 %v2316_v42, %v1260_v60 }
 0xf7b   :  { %1267 = vrot.lane.b32.xlu1 %v1263_v61, %s2469_s3 }
 0xf7c   :  { %1269 = vrot.lane.b32.xlu0 %v1264_v31, %s2469_s3 }
 0xf7f   :  { %v1157_v33 = vpop.permute.xlu0 %1156 }
 0xf80   :  { %v1159_v1 = vmul.f32 %v2318_v63, %v1157_v33 }
 0xf82   :  { %1161 = vrot.lane.b32.xlu1 %v1159_v1, %s2469_s3 }
 0xfed   :  { %v1268_v6 = vpop.permute.xlu1 %1267 }
 0xfee   :  { %v2847_v8 = vadd.f32 %v1268_v6, %v1253_v5  ;;  %v1270_v9 = vpop.permute.xlu0 %1269 }
 0xfef   :  { %v2849_v10 = vadd.f32 %v1270_v9, %v1254_v36 }
 0xff0   :  { %2319 = vtanh.f32 %v2847_v8 }
 0xff1   :  { %2321 = vtanh.f32 %v2849_v10 }
 0xff4   :  { %v1162_v16 = vpop.permute.xlu1 %1161 }
 0xff5   :  { %v2854_v17 = vadd.f32 %v1162_v16, %v1154_v11 }
 0xff7   :  { %2323 = vtanh.f32 %v2854_v17 }
 0xffa   :  { %v2320_v58 = vpop.eup %2319 }
 0xffb   :  { %v2322_v59 = vpop.eup %2321  ;;  %1279 = vrot.lane.b32.xlu0 %v2320_v58, %s2464_s0 }
 0xffc   :  { %1281 = vrot.lane.b32.xlu1 %v2322_v59, %s2464_s0 }
0x1001   :  { %v2324_v54 = vpop.eup %2323 }
0x1002   :  { %1167 = vrot.lane.b32.xlu0 %v2324_v54, %s2464_s0 }
0x106d   :  { %v1280_v20 = vpop.permute.xlu0 %1279 }
0x106e   :  { %v1285_v3 = vmul.f32 %v2314_v56, %v1280_v20  ;;  %v1282_v51 = vpop.permute.xlu1 %1281 }
0x106f   :  { %v1286_v21 = vmul.f32 %v2316_v42, %v1282_v51  ;;  %v2908_v42 = vld [vmem:[%s3003_s5] ss:$0 sm:$0xff] }
0x1070   :  { %v1377_v22 = vpack.c.bf16 %v1285_v3, %v1285_v3 }
0x1071   :  { %v1289_v62 = vrot.slane %v1286_v21, 7  ;;  %v1378_v23 = vpack.c.bf16 %v1286_v21, %v1286_v21 }
0x1072   :  { %v1381_v24 = vunpack.c.l.b16 %v1377_v22 }
0x1073   :  { %v1382_v7 = vunpack.c.l.b16 %v1378_v23  ;;  %v1291_v25 = vsel %vm1290_vm10, %v1289_v62, %v1285_v3 }
0x1074   :  { %v1383_v57 = vrot.slane %v1381_v24, 5  ;;  %1292 = vrot.lane.b32.xlu1 %v1291_v25, %s2469_s3  ;;  %v1168_v47 = vpop.permute.xlu0 %1167  ;;  %v1456_v25 = vrot.slane %v2849_v10, 7 }
0x1075   :  { %v1384_v26 = vrot.slane %v1382_v7, 4  ;;  %v1170_v27 = vmul.f32 %v2318_v63, %v1168_v47  ;;  %v1455_v7 = vrot.slane %v2847_v8, 7 }
0x1077   :  { %v1296_v28 = vrot.slane %v1170_v27, 3  ;;  %v1385_v29 = vsel %vm264_vm3, %v1384_v26, %v1383_v57 }
0x1078   :  { %v1386_v30 = vpack.c.b16 %v1385_v29, %v1385_v29 }
0x1079   :  { %1297 = vrot.lane.b32.xlu0 %v1296_v28, %s2464_s0 }
0x107a   :  { %1387 = vrot.lane.b32.xlu1 %v1386_v30, %s2469_s3 }
0x10e6   :  { %v1293_v32 = vpop.permute.xlu1 %1292 }
0x10eb   :  { %v1298_v34 = vpop.permute.xlu0 %1297 }
0x10ec   :  { %v1388_v48 = vpop.permute.xlu1 %1387  ;;  %v1300_v35 = vsel %vm163_vm4, %v1293_v32, %v1298_v34 }
0x10ed   :  { %v1301_v12 = vpack.c.bf16 %v1300_v35, %v1300_v35  ;;  %2122 = vmatmul.mubr.msk.bf16.vlgmr.msra.gmra.mrb[24].mxu0 %vm163_vm4, %v1388_v48 }
0x10ee   :  { %2126 = vmatpush3.bf16.msra.mxu0 %v2869_v13  ;;  %2133 = vmatprep.mubr.msk.bf16.mxu0 %vm2467_vm0, %v2466_v0 }
0x10ef   :  { %v1303_v37 = vshrl.u32 %v1301_v12, 16  ;;  %v1306_v38 = vshll.u32 %v1301_v12, 16  ;;  %2127 = vmatprep.subr.bf16.mxu0 %v2466_v0 }
0x10f1   :  { %v1305_v40 = vrot.slane %v1303_v37, 2  ;;  %v1308_v41 = vrot.slane %v1306_v38, 3 }
0x10f2   :  { %2128 = vmatpush3.bf16.msra.mxu0 %v2878_v43 }
0x10f3   :  { %v1309_v46 = vor.u32 %v1308_v41, %v1305_v40  ;;  %2129 = vmatprep.subr.bf16.mxu0 %v2466_v0 }
0x10f5   :  { %2114 = vmatmul.mubr.msk.bf16.vlgmr.msra.gmra.mrb[24].mxu1 %vm295_vm5, %v1309_v46 }
0x10f6   :  { %2138 = vmatpush3.bf16.msra.mxu1 %v2823_v44  ;;  %2130 = vmatpush3.bf16.msra.mxu0 %v2887_v19  ;;  %v2898_v44 = vld [vmem:[%s3002_s4 + $0x18] sm:$0xff]  }
0x10f7   :  { %2139 = vmatprep.subr.bf16.mxu1 %v2466_v0  ;;  %2141 = vmatprep.mubr.msk.bf16.mxu1 %vm2467_vm0, %v2466_v0 }
0x10f8   :  { %2131 = vmatprep.subr.bf16.mxu0 %v2466_v0 }
0x10fa   :  { %2140 = vmatpush3.bf16.msra.mxu1 %v2831_v45  ;;  %2132 = vmatpush3.bf16.msra.mxu0 %v2898_v44 }
0x10fb   :  { %2145 = vmatprep.subr.bf16.mxu1 %v2466_v0  ;;  %2157 = vmatprep.subr.bf16.mxu0 %v2466_v0 }
0x11c0   :  { %v1426_v14 = vpop.f32.mrb[24].mxu0 }
0x11c1   :  { %v1433_v49 = vrot.slane %v1426_v14, 2  ;;  %v1434_v50 = vrot.slane %v1426_v14, 3  ;;  %v2123_v52 = vpop.f32.mrb[25].mxu0 }
0x11c2   :  { %v1429_v53 = vpop.f32.mrb[26].mxu0 }
0x11c3   :  { %v1437_v55 = vadd.f32 %v1433_v49, %v2573_v18  ;;  %v1438_v45 = vadd.f32 %v1434_v50, %v2571_v15  ;;  %v2124_v56 = vpop.f32.mrb[27].mxu0 }
0x11c5   :  { %2325 = vtanh.f32 %v1437_v55  ;;  %v1908_v4 = vmul.f32 -1.442695, %v1437_v55  ;;  %v1909_v5 = vmul.f32 -1.442695, %v1438_v45 }
0x11c6   :  { %2327 = vtanh.f32 %v1438_v45 }
0x11c8   :  { %v1347_v39 = vpop.f32.mrb[24].mxu1 }
0x11c9   :  { %v1348_v60 = vadd.f32 %v2908_v42, %v1347_v39  ;;  %v2115_v61 = vpop.f32.mrb[25].mxu1 }
0x11ca   :  { %v1350_v31 = vpop.f32.mrb[26].mxu1 }
0x11cb   :  { %2329 = vtanh.f32 %v1348_v60  ;;  %v2116_v63 = vpop.f32.mrb[27].mxu1  ;;  %v1906_v6 = vmul.f32 -1.442695, %v1348_v60 }
0x11cc   :  { %2331 = vpow2.f32 %v1908_v4 }
0x11cd   :  { %2333 = vpow2.f32 %v1909_v5 }
0x11ce   :  { %2335 = vpow2.f32 %v1906_v6 }
0x11cf   :  { %v2326_v33 = vpop.eup %2325 }
0x11d0   :  { %v2328_v1 = vpop.eup %2327  ;;  %1463 = vrot.lane.b32.xlu0 %v2326_v33, %s2464_s0 }
0x11d1   :  { %1465 = vrot.lane.b32.xlu1 %v2328_v1, %s2464_s0 }
0x11d5   :  { %v2330_v2 = vpop.eup %2329 }
0x11d6   :  { %1362 = vrot.lane.b32.xlu0 %v2330_v2, %s2464_s0  ;;  %v2332_v36 = vpop.eup %2331 }
0x11d7   :  { %v2334_v9 = vpop.eup %2333  ;;  %v1445_v11 = vadd.f32 1.0, %v2332_v36 }
0x11d8   :  { %v1446_v16 = vadd.f32 1.0, %v2334_v9  ;;  %v2336_v58 = vpop.eup %2335 }
0x11d9   :  { %2337 = vrcp.f32 %v1445_v11  ;;  %v1356_v59 = vadd.f32 1.0, %v2336_v58 }
0x11da   :  { %2339 = vrcp.f32 %v1446_v16 }
0x11db   :  { %2341 = vrcp.f32 %v1356_v59 }
0x11e3   :  { %v2338_v54 = vpop.eup %2337 }
0x11e4   :  { %v2340_v3 = vpop.eup %2339  ;;  %v1459_v57 = vmul.f32 %v2338_v54, %v1455_v7 }
0x11e5   :  { %v2342_v62 = vpop.eup %2341  ;;  %v1460_v47 = vmul.f32 %v2340_v3, %v1456_v25 }
0x11e6   :  { %v1360_v30 = vmul.f32 %v2342_v62, %v2854_v17 }
0x1242   :  { %v1464_v20 = vpop.permute.xlu0 %1463 }
0x1243   :  { %v1466_v51 = vpop.permute.xlu1 %1465  ;;  %v1469_v21 = vmul.f32 %v2338_v54, %v1464_v20 }
0x1244   :  { %v1470_v22 = vmul.f32 %v2340_v3, %v1466_v51 }
0x1245   :  { %1473 = vrot.lane.b32.xlu1 %v1469_v21, %s2469_s3 }
0x1246   :  { %1475 = vrot.lane.b32.xlu0 %v1470_v22, %s2469_s3 }
0x1248   :  { %v1363_v23 = vpop.permute.xlu0 %1362 }
0x1249   :  { %v1365_v24 = vmul.f32 %v2342_v62, %v1363_v23 }
0x124b   :  { %1367 = vrot.lane.b32.xlu1 %v1365_v24, %s2469_s3 }
0x12b7   :  { %v1474_v26 = vpop.permute.xlu1 %1473 }
0x12b8   :  { %v1476_v27 = vpop.permute.xlu0 %1475  ;;  %v2919_v28 = vadd.f32 %v1474_v26, %v1459_v57 }
0x12b9   :  { %v2921_v29 = vadd.f32 %v1476_v27, %v1460_v47 }
0x12ba   :  { %2343 = vtanh.f32 %v2919_v28 }
0x12bb   :  { %2345 = vtanh.f32 %v2921_v29 }
0x12bd   :  { %v1368_v32 = vpop.permute.xlu1 %1367 }
0x12be   :  { %v2926_v34 = vadd.f32 %v1368_v32, %v1360_v30 }
0x12c0   :  { %2347 = vtanh.f32 %v2926_v34 }
0x12c4   :  { %v2344_v8 = vpop.eup %2343 }
0x12c5   :  { %v2346_v10 = vpop.eup %2345  ;;  %1485 = vrot.lane.b32.xlu0 %v2344_v8, %s2464_s0 }
0x12c6   :  { %1487 = vrot.lane.b32.xlu1 %v2346_v10, %s2464_s0  ;;  %v1656_v10 = vrot.slane %v2921_v29, 7 }
0x12ca   :  { %v2348_v48 = vpop.eup %2347 }
0x12cb   :  { %1373 = vrot.lane.b32.xlu0 %v2348_v48, %s2464_s0 }
0x1337   :  { %v1486_v35 = vpop.permute.xlu0 %1485 }
0x1338   :  { %v1488_v12 = vpop.permute.xlu1 %1487  ;;  %v1491_v37 = vmul.f32 %v2338_v54, %v1486_v35 }
0x1339   :  { %v1492_v38 = vmul.f32 %v2340_v3, %v1488_v12 }
0x133a   :  { %v1577_v40 = vpack.c.bf16 %v1491_v37, %v1491_v37 }
0x133b   :  { %v1495_v17 = vrot.slane %v1492_v38, 7  ;;  %v1578_v41 = vpack.c.bf16 %v1492_v38, %v1492_v38 }
0x133c   :  { %v1581_v46 = vunpack.c.l.b16 %v1577_v40  ;;  %v1655_v40 = vrot.slane %v2919_v28, 7 }
0x133d   :  { %v1582_v14 = vunpack.c.l.b16 %v1578_v41  ;;  %v1497_v49 = vsel %vm1496_vm11, %v1495_v17, %v1491_v37  ;;  %v1374_v50 = vpop.permute.xlu0 %1373 }
0x133e   :  { %v1583_v52 = vrot.slane %v1581_v46, 6  ;;  %1498 = vrot.lane.b32.xlu1 %v1497_v49, %s2469_s3  ;;  %v1376_v53 = vmul.f32 %v2342_v62, %v1374_v50 }
0x133f   :  { %v1584_v55 = vrot.slane %v1582_v14, 5 }
0x1340   :  { %v1502_v45 = vrot.slane %v1376_v53, 2 }
0x1341   :  { %v1585_v56 = vsel %vm264_vm3, %v1584_v55, %v1583_v52 }
0x1342   :  { %v1586_v39 = vpack.c.b16 %v1585_v56, %v1585_v56  ;;  %1503 = vrot.lane.b32.xlu0 %v1502_v45, %s2464_s0 }
0x1344   :  { %1587 = vrot.lane.b32.xlu1 %v1586_v39, %s2469_s3 }
0x13b0   :  { %v1499_v60 = vpop.permute.xlu1 %1498 }
0x13b4   :  { %v1504_v61 = vpop.permute.xlu0 %1503 }
0x13b5   :  { %v1506_v31 = vsel %vm163_vm4, %v1499_v60, %v1504_v61 }
0x13b6   :  { %v1588_v63 = vpop.permute.xlu1 %1587  ;;  %v1507_v33 = vpack.c.bf16 %v1506_v31, %v1506_v31 }
0x13b7   :  { %2142 = vmatmul.mubr.msk.bf16.vlgmr.msra.gmra.mrb[28].mxu1 %vm163_vm4, %v1588_v63 }
0x13b8   :  { %v1509_v1 = vrot.slane %v1507_v33, 3  ;;  %2146 = vmatpush3.bf16.msra.mxu1 %v2869_v13  ;;  %2153 = vmatprep.mubr.msk.bf16.mxu1 %vm2467_vm0, %v2466_v0 }
0x13b9   :  { %2147 = vmatprep.subr.bf16.mxu1 %v2466_v0 }
0x13ba   :  { %2134 = vmatmul.mubr.msk.bf16.vlgmr.msra.gmra.mrb[28].mxu0 %vm295_vm5, %v1509_v1 }
0x13bb   :  { %2161 = vmatprep.mubr.msk.bf16.mxu0 %vm2467_vm0, %v2466_v0 }
0x13bc   :  { %2148 = vmatpush3.bf16.msra.mxu1 %v2878_v43 }
0x13bd   :  { %2149 = vmatprep.subr.bf16.mxu1 %v2466_v0 }
0x13c0   :  { %2150 = vmatpush3.bf16.msra.mxu1 %v2887_v19 }
0x13c1   :  { %2151 = vmatprep.subr.bf16.mxu1 %v2466_v0 }
0x13c4   :  { %2152 = vmatpush3.bf16.msra.mxu1 %v2898_v44 }
0x148a   :  { %v1626_v13 = vpop.f32.mrb[28].mxu1 }
0x148b   :  { %v1634_v2 = vrot.slane %v1626_v13, 2  ;;  %v2143_v4 = vpop.f32.mrb[29].mxu1  ;;  %v1633_v58 = vrot.slane %v1626_v13, 1 }
0x148c   :  { %v1629_v5 = vpop.f32.mrb[30].mxu1 }
0x148d   :  { %v1638_v6 = vadd.f32 %v1634_v2, %v2571_v15  ;;  %v2144_v36 = vpop.f32.mrb[31].mxu1  ;;  %v1547_v9 = vpop.f32.mrb[28].mxu0  ;;  %v1637_v19 = vadd.f32 %v1633_v58, %v2573_v18 }
0x148e   :  { %v2135_v11 = vpop.f32.mrb[29].mxu0  ;;  %v1548_v43 = vadd.f32 %v2908_v42, %v1547_v9 }
0x148f   :  { %v1550_v16 = vpop.f32.mrb[30].mxu0  ;;  %2349 = vtanh.f32 %v1638_v6  ;;  %v1914_v20 = vmul.f32 -1.442695, %v1638_v6  ;;  %v1913_v51 = vmul.f32 -1.442695, %v1637_v19 }
0x1490   :  { %v2136_v59 = vpop.f32.mrb[31].mxu0  ;;  %2351 = vtanh.f32 %v1548_v43  ;;  %v1911_v3 = vmul.f32 -1.442695, %v1548_v43 }
0x1491   :  { %2353 = vtanh.f32 %v1637_v19 }
0x1492   :  { %2355 = vpow2.f32 %v1914_v20 }
0x1493   :  { %2357 = vpow2.f32 %v1911_v3 }
0x1494   :  { %2359 = vpow2.f32 %v1913_v51 }
0x1499   :  { %v2350_v44 = vpop.eup %2349 }
0x149a   :  { %1665 = vrot.lane.b32.xlu1 %v2350_v44, %s2464_s0  ;;  %v2352_v54 = vpop.eup %2351 }
0x149b   :  { %1562 = vrot.lane.b32.xlu0 %v2352_v54, %s2464_s0  ;;  %v2354_v15 = vpop.eup %2353 }
0x149c   :  { %v2356_v21 = vpop.eup %2355 }
0x149d   :  { %v1646_v22 = vadd.f32 1.0, %v2356_v21  ;;  %v2358_v18 = vpop.eup %2357 }
0x149e   :  { %v1556_v62 = vadd.f32 1.0, %v2358_v18  ;;  %v2360_v23 = vpop.eup %2359  ;;  %v2187_v18 = vld [vmem:[%s3004_s6] sm:$0xff]  }
0x149f   :  { %1663 = vrot.lane.b32.xlu0 %v2354_v15, %s2464_s0  ;;  %2361 = vrcp.f32 %v1646_v22  ;;  %v1645_v24 = vadd.f32 1.0, %v2360_v23  ;;  %2158 = vmatpush3.bf16.msra.mxu0 %v2187_v18 }
0x14a0   :  { %2363 = vrcp.f32 %v1556_v62  ;;  %v2188_v62 = vld [vmem:[%s3004_s6 + $0x8] sm:$0xff]   ;;  %2159 = vmatprep.subr.bf16.mxu0 %v2466_v0  ;;  %s1858_s6 = sshll.u32 %s2470_s12, 4  ;;  %s1859_s6 = int_to_ptr.vmem [resolvable:$true] %s1858_s6 }
0x14a1   :  { %2365 = vrcp.f32 %v1645_v24  ;;  %p2437_p3 = scmp.lt.s32.totalorder %s1859_s6, %s1859_s6 }
0x14a3   :  { %2160 = vmatpush3.bf16.msra.mxu0 %v2188_v62 }
0x14a9   :  { %v2362_v7 = vpop.eup %2361 }
0x14aa   :  { %v2364_v47 = vpop.eup %2363  ;;  %v1660_v48 = vmul.f32 %v2362_v7, %v1656_v10 }
0x14ab   :  { %v2366_v30 = vpop.eup %2365  ;;  %v1560_v37 = vmul.f32 %v2364_v47, %v2926_v34 }
0x14ac   :  { %v1659_v41 = vmul.f32 %v2366_v30, %v1655_v40 }
0x150c   :  { %v1666_v25 = vpop.permute.xlu1 %1665 }
0x150d   :  { %v1670_v57 = vmul.f32 %v2362_v7, %v1666_v25  ;;  %v1563_v26 = vpop.permute.xlu0 %1562 }
0x150e   :  { %v1565_v27 = vmul.f32 %v2364_v47, %v1563_v26 }
0x150f   :  { %1675 = vrot.lane.b32.xlu0 %v1670_v57, %s2469_s3 }
0x1510   :  { %1567 = vrot.lane.b32.xlu1 %v1565_v27, %s2469_s3 }
0x1511   :  { %v1664_v32 = vpop.permute.xlu0 %1663 }
0x1512   :  { %v1669_v8 = vmul.f32 %v2366_v30, %v1664_v32 }
0x1514   :  { %1673 = vrot.lane.b32.xlu1 %v1669_v8, %s2469_s3 }
0x1581   :  { %v1676_v35 = vpop.permute.xlu0 %1675 }
0x1582   :  { %v1680_v12 = vadd.f32 %v1676_v35, %v1660_v48  ;;  %v1568_v38 = vpop.permute.xlu1 %1567 }
0x1583   :  { %v1570_v17 = vadd.f32 %v1568_v38, %v1560_v37 }
0x1584   :  { %2367 = vtanh.f32 %v1680_v12 }
0x1585   :  { %2369 = vtanh.f32 %v1570_v17 }
0x1586   :  { %v1674_v46 = vpop.permute.xlu1 %1673 }
0x1587   :  { %v1679_v14 = vadd.f32 %v1674_v46, %v1659_v41 }
0x1589   :  { %2371 = vtanh.f32 %v1679_v14 }
0x158e   :  { %v2368_v49 = vpop.eup %2367 }
0x158f   :  { %1687 = vrot.lane.b32.xlu1 %v2368_v49, %s2464_s0  ;;  %v2370_v50 = vpop.eup %2369 }
0x1590   :  { %1573 = vrot.lane.b32.xlu0 %v2370_v50, %s2464_s0 }
0x1593   :  { %v2372_v29 = vpop.eup %2371 }
0x1594   :  { %1685 = vrot.lane.b32.xlu0 %v2372_v29, %s2464_s0 }
0x1601   :  { %v1688_v52 = vpop.permute.xlu1 %1687 }
0x1602   :  { %v1574_v34 = vpop.permute.xlu0 %1573  ;;  %v1692_v53 = vmul.f32 %v2362_v7, %v1688_v52 }
0x1603   :  { %v1576_v55 = vmul.f32 %v2364_v47, %v1574_v34  ;;  %v1917_v47 = vld [vmem:[%s3005_s7] ss:$0 sm:$0xff] }
0x1604   :  { %v1695_v56 = vrot.slane %v1692_v53, 7 }
0x1605   :  { %v1703_v28 = vrot.slane %v1576_v55, 1 }
0x1606   :  { %v1686_v45 = vpop.permute.xlu0 %1685 }
0x1607   :  { %v1691_v39 = vmul.f32 %v2366_v30, %v1686_v45  ;;  %1704 = vrot.lane.b32.xlu0 %v1703_v28, %s2464_s0 }
0x1609   :  { %v2176_v60 = vpack.i.bf16 %v1695_v56, %v1691_v39 }
0x160b   :  { %2177 = vrot.lane.b32.xlu1 %v2176_v60, %s2469_s3 }
0x1679   :  { %v1705_v33 = vpop.permute.xlu0 %1704 }
0x167d   :  { %v2178_v61 = vpop.permute.xlu1 %2177 }
0x167e   :  { %v2180_v31 = vunpack.i.h.bf16 %v2178_v61  ;;  %v2179_v63 = vunpack.i.l.bf16 %v2178_v61 }
0x1680   :  { %v1707_v1 = vsel %vm163_vm4, %v2179_v63, %v1705_v33  ;;  %v1708_v13 = vsel %vm163_vm4, %v2180_v31, %v1705_v33 }
0x1681   :  { %v1709_v2 = vpack.c.bf16 %v1708_v13, %v1707_v1 }
0x1683   :  { %v1711_v4 = vshrl.u32 %v1709_v2, 16  ;;  %v1714_v5 = vshll.u32 %v1709_v2, 16 }
0x1685   :  { %v1713_v6 = vrot.slane %v1711_v4, 3  ;;  %v1716_v36 = vrot.slane %v1714_v5, 4 }
0x1687   :  { %v1717_v9 = vor.u32 %v1716_v36, %v1713_v6 }
0x1689   :  { %2154 = vmatmul.mubr.msk.bf16.vlgmr.msra.gmra.mrb[32].mxu1 %vm295_vm5, %v1717_v9 }
0x175c   :  { %v1755_v11 = vpop.f32.mrb[32].mxu1 }
0x175d   :  { %v1756_v16 = vadd.f32 %v2908_v42, %v1755_v11  ;;  %v2155_v58 = vpop.f32.mrb[33].mxu1 }
0x175e   :  { %v1758_v43 = vpop.f32.mrb[34].mxu1 }
0x175f   :  { %2373 = vtanh.f32 %v1756_v16  ;;  %v2156_v59 = vpop.f32.mrb[35].mxu1  ;;  %v1916_v44 = vmul.f32 -1.442695, %v1756_v16 }
0x1761   :  { %2375 = vpow2.f32 %v1916_v44 }
0x1769   :  { %v2374_v19 = vpop.eup %2373 }
0x176a   :  { %1770 = vrot.lane.b32.xlu1 %v2374_v19, %s2464_s0 }
0x176b   :  { %v2376_v54 = vpop.eup %2375 }
0x176c   :  { %v1764_v15 = vadd.f32 1.0, %v2376_v54 }
0x176e   :  { %2377 = vrcp.f32 %v1764_v15 }
0x1778   :  { %v2378_v20 = vpop.eup %2377 }
0x1779   :  { %v1768_v21 = vmul.f32 %v2378_v20, %v1570_v17 }
0x17dc   :  { %v1771_v3 = vpop.permute.xlu1 %1770 }
0x17dd   :  { %v1773_v51 = vmul.f32 %v2378_v20, %v1771_v3 }
0x17df   :  { %1775 = vrot.lane.b32.xlu0 %v1773_v51, %s2469_s3 }
0x1851   :  { %v1776_v22 = vpop.permute.xlu0 %1775 }
0x1852   :  { %v1778_v42 = vadd.f32 %v1776_v22, %v1768_v21 }
0x1854   :  { %2379 = vtanh.f32 %v1778_v42 }
0x185e   :  { %v2380_v23 = vpop.eup %2379 }
0x185f   :  { %1781 = vrot.lane.b32.xlu1 %v2380_v23, %s2464_s0  ;;  %s2432_s0 = scalar_lea.vmem %s1859_s6, 32 }
0x1860   :  { %p2433_p2 = scmp.ne.s32.totalorder %s1859_s6, %s2432_s0  ;;  %p2438_p4 = scmp.lt.s32.totalorder %s2432_s0, %s2432_s0 }
0x1862   :  { %p2439_p5 = por %p2438_p4, %p2437_p3 }
0x1864   :  { %p2440_p6 = pnand %p2439_p5, %p2433_p2 }
0x18d1   :  { %v1782_v24 = vpop.permute.xlu1 %1781 }
0x18d2   :  { %v1784_v7 = vmul.f32 %v2378_v20, %v1782_v24 }
0x18d4   :  { %v1785_v25 = vpack.c.bf16 %v1784_v7, %v1784_v7 }
0x18d6   :  { %1793 = vrot.lane.b32.xlu0 %v1785_v25, %s2469_s3 }
0x1948   :  { %v1794_v57 = vpop.permute.xlu0 %1793 }
0x1949   :  { %2162 = vmatmul.mubr.msk.bf16.vlgmr.msra.gmra.mrb[32].mxu0 %vm163_vm4, %v1794_v57 }
0x1a1c   :  { %v1844_v26 = vpop.f32.mrb[32].mxu0 }
0x1a1d   :  { %v1845_v0 = vadd.f32 %v1917_v47, %v1844_v26  ;;  %v2163_v27 = vpop.f32.mrb[33].mxu0 }
0x1a1e   :  { %v1847_v30 = vpop.f32.mrb[34].mxu0 }
0x1a1f   :  { %v2164_v32 = vpop.f32.mrb[35].mxu0  ;;  %1851 = vst.msk [vmem:[#allocation7] sm:$0x3] %vm1850_vm12, %v1845_v0 }
0x1a20   :  { %2443 = shalt.err (!%p2440_p6)
}
0x1a21   :  { %s2444_s7 = scalar_lea.hbm %s3006_s8, 32 }
0x1a22   :  { %p2445_p7 = scmp.ne.s32.totalorder %s3006_s8, %s2444_s7  ;;  %p2448_p8 = scmp.lt.u32.totalorder %s2444_s7, %s3006_s8 }
0x1a24   :  { %p2450_p9 = pnand %p2448_p8, %p2445_p7 }
0x1a26   :  { %2453 = shalt.err (!%p2450_p9)
}
0x1a27   :  { %1861 = dma.vmem_to_hbm [thread:$0]  %s1859_s6, 32, %s3006_s8, [#allocation4]  }
0x1a28   :  { %2458 = dma.done.wait [#allocation4], 32  }
0x1a29   :  { %2459 = vsyncadd [#allocation4], 4294967264 }
0x1a2a   :  { %1865 = vsyncpa [#allocation3], 1 }
0x1a2b   :  { %1866 = vsyncpa [#allocation6], 1 }
0x1a2c   :  { %1867 = vsyncpa [#allocation4], 1 }

</bundles_post_ra>
